<compile_context>
chip_gen: v7x
topology: tpu7x:2x2x1
jax: 0.10.0
libtpu: 0.0.40
codegen_flags: <defaults>
</compile_context>

<pallas_src>
import functools
import math

import jax
import jax.numpy as jnp
from jax import lax
from jax.experimental import pallas as pl
from jax.experimental.pallas import tpu as pltpu


def mha_kernel(num_heads, head_dim, scaling, kv_same, need_weights, compute_dtype,
               q_ref, k_ref, v_ref,
               wq_ref, wkv_ref, wo_ref,
               bq_ref, bkv_ref, bo_ref,
               *out_and_scratch):
    """One grid step = one batch element x one query-time tile.

    q_ref  : (1, tT, E) bf16 query tile
    k_ref  : (1, S, E)  key input   (block constant over t -> fetched once per batch)
    v_ref  : (1, S, E)  value input (unused when kv_same)
    wq_ref : (E, E)   wkv_ref: (E, 2E) = [Wk^T | Wv^T]   wo_ref: (E, E)   (bf16)
    bq/bkv/bo : (1, E) / (1, 2E) / (1, E) float32
    outputs: out (1, tT, E) f32  [+ attnw (1, tT, S) f32 if need_weights]
    scratch: kv_scr (S, 2E) bf16 -- projected K|V, reused across the t axis.
    """
    if need_weights:
        out_ref, attnw_ref, kv_scr = out_and_scratch
    else:
        out_ref, kv_scr = out_and_scratch
        attnw_ref = None

    E = wq_ref.shape[0]
    t_idx = pl.program_id(1)

    # ---- K/V projection: only on the first query tile of each batch element. ----
    @pl.when(t_idx == 0)
    def _project_kv():
        xk = k_ref[0]                                              # (S, E)
        if kv_same:
            # key is value: one fused (S, E) @ (E, 2E) matmul.
            kv = jnp.dot(xk, wkv_ref[...],
                         preferred_element_type=jnp.float32) + bkv_ref[...]
        else:
            xv = v_ref[0]
            k_p = jnp.dot(xk, wkv_ref[:, :E],
                          preferred_element_type=jnp.float32) + bkv_ref[:, :E]
            v_p = jnp.dot(xv, wkv_ref[:, E:],
                          preferred_element_type=jnp.float32) + bkv_ref[:, E:]
            kv = jnp.concatenate([k_p, v_p], axis=-1)
        kv_scr[...] = kv.astype(compute_dtype)

    # ---- Q projection for this tile: (x @ Wq + bq) * scaling (PyTorch order). ----
    xq = q_ref[0]                                                  # (tT, E)
    q = (jnp.dot(xq, wq_ref[...], preferred_element_type=jnp.float32)
         + bq_ref[...]) * scaling
    q = q.astype(compute_dtype)

    k = kv_scr[:, :E]                                              # (S, E) bf16
    v = kv_scr[:, E:]                                              # (S, E) bf16

    if need_weights:
        attnw_ref[...] = jnp.zeros_like(attnw_ref)

    # ---- Per-head attention (head slices are lane-aligned when head_dim % 128 == 0). ----
    ctx_parts = []
    for h in range(num_heads):
        sl = slice(h * head_dim, (h + 1) * head_dim)
        qh = q[:, sl]                                              # (tT, hd)
        kh = k[:, sl]                                              # (S, hd)
        vh = v[:, sl]                                              # (S, hd)

        # q @ k^T without an explicit transpose: contract the last dims.
        s = lax.dot_general(qh, kh, (((1,), (1,)), ((), ())),
                            preferred_element_type=jnp.float32)    # (tT, S)
        s = s - jnp.max(s, axis=-1, keepdims=True)
        e = jnp.exp(s)
        p = e * pl.reciprocal(jnp.sum(e, axis=-1, keepdims=True), approx=True)

        if need_weights:
            attnw_ref[0] += p

        ctx_parts.append(jnp.dot(p.astype(compute_dtype), vh,
                                 preferred_element_type=jnp.float32)
                         .astype(compute_dtype))                   # (tT, hd)

    # ---- Single full-E-contraction output projection of the concatenated heads. ----
    ctx = jnp.concatenate(ctx_parts, axis=-1)                      # (tT, E)
    out = jnp.dot(ctx, wo_ref[...], preferred_element_type=jnp.float32) + bo_ref[...]
    out_ref[0] = out.astype(out_ref.dtype)

    if need_weights:
        attnw_ref[0] = attnw_ref[0] * (1.0 / num_heads)


def _pick_t_block(T):
    for cand in (256, 128):
        if T % cand == 0 and T > cand:
            return cand
    return T


def multihead_attention(query, key, value, params, num_heads, *,
                        need_weights=True, compute_dtype=jnp.bfloat16, t_block=None):
    """query: (T, B, E); key/value: (S, B, E).
    Returns (attn (T, B, E) f32, attn_weights (B, T, S) f32 or None)."""
    T, B, E = query.shape
    S = key.shape[0]
    assert key.shape == value.shape
    head_dim = E // num_heads
    assert head_dim * num_heads == E, "embed_dim must be divisible by num_heads"
    scaling = float(head_dim) ** -0.5
    kv_same = key is value

    if t_block is None:
        t_block = _pick_t_block(T)
    assert T % t_block == 0 and (t_block % 8 == 0 or t_block == T)
    n_t = T // t_block

    in_w = params["in_proj_weight"]      # (3E, E)
    in_b = params["in_proj_bias"]        # (3E,)
    out_w = params["out_proj_weight"]    # (E, E)
    out_b = params["out_proj_bias"]      # (E,)

    # F.linear is x @ W^T: pre-transpose once outside the kernel. K and V weights are
    # fused into one (E, 2E) operand; all matmul operands staged in bf16.
    wq = in_w[0:E].T.astype(compute_dtype)                  # (E, E)
    wkv = in_w[E:3 * E].T.astype(compute_dtype)             # (E, 2E) = [Wk^T | Wv^T]
    wo = out_w.T.astype(compute_dtype)                      # (E, E)
    bq = in_b[0:E].reshape(1, E).astype(jnp.float32)
    bkv = in_b[E:3 * E].reshape(1, 2 * E).astype(jnp.float32)
    bo = out_b.reshape(1, E).astype(jnp.float32)

    # (T, B, E) -> (B, T, E), bf16.
    # TODO(synk): feed the (T,B,E) layout directly (squeezed-B blocks / allow_input_fusion)
    # to drop this extra HBM pass of the activations.
    qb = jnp.transpose(query, (1, 0, 2)).astype(compute_dtype)
    kb = jnp.transpose(key, (1, 0, 2)).astype(compute_dtype)
    vb = kb if kv_same else jnp.transpose(value, (1, 0, 2)).astype(compute_dtype)

    kernel = functools.partial(mha_kernel, num_heads, head_dim, scaling,
                               kv_same, need_weights, compute_dtype)

    out_shapes = [jax.ShapeDtypeStruct((B, T, E), jnp.float32)]
    out_specs = [pl.BlockSpec((1, t_block, E), lambda b, t: (b, t, 0))]
    if need_weights:
        out_shapes.append(jax.ShapeDtypeStruct((B, T, S), jnp.float32))
        out_specs.append(pl.BlockSpec((1, t_block, S), lambda b, t: (b, t, 0)))

    def run(single_buffer_weights):
        def const_spec(shape):
            kwargs = {}
            if single_buffer_weights and hasattr(pl, "Buffered"):
                # Weights/biases never change across the grid: single-buffer them so the
                # reclaimed VMEM can go to larger activation tiles (matters on v7x 64 MiB).
                kwargs["pipeline_mode"] = pl.Buffered(1)
            return pl.BlockSpec(shape, lambda b, t: (0,) * len(shape), **kwargs)

        return pl.pallas_call(
            kernel,
            out_shape=tuple(out_shapes),
            grid=(B, n_t),
            in_specs=[
                pl.BlockSpec((1, t_block, E), lambda b, t: (b, t, 0)),  # q tile
                pl.BlockSpec((1, S, E), lambda b, t: (b, 0, 0)),        # key (reused over t)
                pl.BlockSpec((1, S, E), lambda b, t: (b, 0, 0)),        # value
                const_spec((E, E)),        # Wq
                const_spec((E, 2 * E)),    # [Wk | Wv]
                const_spec((E, E)),        # Wo
                const_spec((1, E)),        # bq
                const_spec((1, 2 * E)),    # bkv
                const_spec((1, E)),        # bo
            ],
            out_specs=tuple(out_specs),
            scratch_shapes=[pltpu.VMEM((S, 2 * E), compute_dtype)],
            compiler_params=pltpu.CompilerParams(
                dimension_semantics=("parallel", "arbitrary")),
        )(qb, kb, vb, wq, wkv, wo, bq, bkv, bo)

    try:
        results = run(True)
    except Exception:
        # pl.Buffered(1) not accepted by this jax build -> fall back to default buffering.
        results = run(False)

    out = results[0]
    attn = jnp.transpose(out, (1, 0, 2))            # back to (T, B, E)
    attn_w = results[1] if need_weights else None
    return attn, attn_w


def init_params(key, embed_dim):
    """Deterministic xavier-uniform-style weights. The PyTorch module zero-inits the
    biases; small random biases are used here so the bias path is actually exercised."""
    k1, k2, k3, k4 = jax.random.split(key, 4)
    bound_in = math.sqrt(6.0 / (3 * embed_dim + embed_dim))
    in_w = jax.random.uniform(k1, (3 * embed_dim, embed_dim), jnp.float32,
                              -bound_in, bound_in)
    bound_out = math.sqrt(6.0 / (2 * embed_dim))
    out_w = jax.random.uniform(k2, (embed_dim, embed_dim), jnp.float32,
                               -bound_out, bound_out)
    in_b = 0.1 * jax.random.normal(k3, (3 * embed_dim,), jnp.float32)
    out_b = 0.1 * jax.random.normal(k4, (embed_dim,), jnp.float32)
    return dict(in_proj_weight=in_w, in_proj_bias=in_b,
                out_proj_weight=out_w, out_proj_bias=out_b)


def reference(query, key, value, params, num_heads):
    """Pure-JAX (f32) transcription of the PyTorch forward, for correctness checking."""
    T, B, E = query.shape
    hd = E // num_heads
    in_w = params["in_proj_weight"]
    in_b = params["in_proj_bias"]
    q = query @ in_w[:E].T + in_b[:E]
    k = key @ in_w[E:2 * E].T + in_b[E:2 * E]
    v = value @ in_w[2 * E:].T + in_b[2 * E:]
    q = q * (hd ** -0.5)
    q = q.reshape(T, B * num_heads, hd).transpose(1, 0, 2)
    k = k.reshape(-1, B * num_heads, hd).transpose(1, 0, 2)
    v = v.reshape(-1, B * num_heads, hd).transpose(1, 0, 2)
    w = jnp.einsum('btd,bsd->bts', q, k)
    w = jax.nn.softmax(w, axis=-1)
    a = jnp.einsum('bts,bsd->btd', w, v)
    a = a.transpose(1, 0, 2).reshape(T, B, E)
    a = a @ params["out_proj_weight"].T + params["out_proj_bias"]
    w = w.reshape(B, num_heads, T, -1).sum(1) / num_heads
    return a, w


if __name__ == "__main__":
    E, H = 32, 4   # embed_dim, num_heads (head_dim = 8)

    key0 = jax.random.PRNGKey(0)
    kx, kval, kp = jax.random.split(key0, 3)
    params = init_params(kp, E)

    tol = dict(atol=2e-2, rtol=2e-2)   # bf16 MXU staging -> loosened tolerance

    # 1) Self-attention (q is k is v), query axis tiled into two blocks: exercises the
    #    fused K|V projection and the pl.when(t==0) VMEM scratch-reuse path.
    T, B = 16, 2
    x = jax.random.normal(kx, (T, B, E), jnp.float32)
    attn, attn_w = multihead_attention(x, x, x, params, H, t_block=8)
    attn, attn_w = jax.block_until_ready((attn, attn_w))
    ref_a, ref_w = reference(x, x, x, params, H)
    assert attn.shape == (T, B, E) and attn_w.shape == (B, T, T)
    assert jnp.allclose(attn, ref_a, **tol)
    assert jnp.allclose(attn_w, ref_w, **tol)

    # 2) Cross-attention with distinct key/value tensors (non-fused K/V path), S != T.
    Tq, S = 8, 16
    q2 = jax.random.normal(jax.random.fold_in(kx, 1), (Tq, B, E), jnp.float32)
    k2 = jax.random.normal(jax.random.fold_in(kx, 2), (S, B, E), jnp.float32)
    v2 = jax.random.normal(kval, (S, B, E), jnp.float32)
    attn2, attn_w2 = multihead_attention(q2, k2, v2, params, H)
    attn2, attn_w2 = jax.block_until_ready((attn2, attn_w2))
    ref_a2, ref_w2 = reference(q2, k2, v2, params, H)
    assert attn2.shape == (Tq, B, E) and attn_w2.shape == (B, Tq, S)
    assert jnp.allclose(attn2, ref_a2, **tol)
    assert jnp.allclose(attn_w2, ref_w2, **tol)

    # 3) need_weights=False fast path (skips the (B, T, S) HBM write stream).
    attn3, w3 = multihead_attention(x, x, x, params, H, need_weights=False)
    attn3 = jax.block_until_ready(attn3)
    assert w3 is None
    assert jnp.allclose(attn3, ref_a, **tol)

    print("KERNEL_OK")
</pallas_src>

<mosaic_0001>
module attributes {stable_mosaic.version = 11 : i64} {
  func.func @mha_kernel(%arg0: i32, %arg1: i32, %arg2: memref<1x8x32xbf16, #tpu.memory_space<vmem>>, %arg3: memref<1x16x32xbf16, #tpu.memory_space<vmem>>, %arg4: memref<1x16x32xbf16, #tpu.memory_space<vmem>>, %arg5: memref<32x32xbf16, #tpu.memory_space<vmem>>, %arg6: memref<32x64xbf16, #tpu.memory_space<vmem>>, %arg7: memref<32x32xbf16, #tpu.memory_space<vmem>>, %arg8: memref<1x32xf32, #tpu.memory_space<vmem>>, %arg9: memref<1x64xf32, #tpu.memory_space<vmem>>, %arg10: memref<1x32xf32, #tpu.memory_space<vmem>>, %arg11: memref<1x8x32xf32, #tpu.memory_space<vmem>>, %arg12: memref<1x8x16xf32, #tpu.memory_space<vmem>>, %arg13: memref<16x64xbf16, #tpu.memory_space<vmem>>) attributes {dimension_semantics = [#tpu.dimension_semantics<parallel>, #tpu.dimension_semantics<arbitrary>], iteration_bounds = array<i64: 2, 2>, scalar_prefetch = 0 : i64, scratch_operands = 1 : i64, tpu.core_type = #tpu.core_type<tc>, window_params = [{transform_indices = @transform_0, window_bounds = array<i64: 1, 8, 32>}, {transform_indices = @transform_1, window_bounds = array<i64: 1, 16, 32>}, {transform_indices = @transform_2, window_bounds = array<i64: 1, 16, 32>}, {pipeline_mode = #tpu.pipeline_mode<synchronous>, transform_indices = @transform_3, window_bounds = array<i64: 32, 32>}, {pipeline_mode = #tpu.pipeline_mode<synchronous>, transform_indices = @transform_4, window_bounds = array<i64: 32, 64>}, {pipeline_mode = #tpu.pipeline_mode<synchronous>, transform_indices = @transform_5, window_bounds = array<i64: 32, 32>}, {pipeline_mode = #tpu.pipeline_mode<synchronous>, transform_indices = @transform_6, window_bounds = array<i64: 1, 32>}, {pipeline_mode = #tpu.pipeline_mode<synchronous>, transform_indices = @transform_7, window_bounds = array<i64: 1, 64>}, {pipeline_mode = #tpu.pipeline_mode<synchronous>, transform_indices = @transform_8, window_bounds = array<i64: 1, 32>}, {transform_indices = @transform_9, window_bounds = array<i64: 1, 8, 32>}, {transform_indices = @transform_10, window_bounds = array<i64: 1, 8, 16>}]} {
    %c0_i32 = arith.constant 0 : i32
    %0 = arith.cmpi eq, %arg1, %c0_i32 : i32
    %1 = arith.extui %0 : i1 to i32
    %c0_i32_0 = arith.constant 0 : i32
    %2 = arith.cmpi ne, %1, %c0_i32_0 : i32
    scf.if %2 {
      %c0_70 = arith.constant 0 : index
      %c0_71 = arith.constant 0 : index
      %c0_72 = arith.constant 0 : index
      %125 = vector.load %arg3[%c0_70, %c0_71, %c0_72] : memref<1x16x32xbf16, #tpu.memory_space<vmem>>, vector<1x16x32xbf16>
      %126 = vector.shape_cast %125 : vector<1x16x32xbf16> to vector<16x32xbf16>
      %c0_73 = arith.constant 0 : index
      %c0_74 = arith.constant 0 : index
      %127 = vector.load %arg6[%c0_73, %c0_74] : memref<32x64xbf16, #tpu.memory_space<vmem>>, vector<32x64xbf16>
      %cst_75 = arith.constant dense<0.000000e+00> : vector<16x64xf32>
      %128 = tpu.matmul %126, %127, %cst_75 {dimension_numbers = #tpu.dot_dimension_numbers<[1], [0], [0], [1], [0, 0, 1, 1], [], []>} : vector<16x32xbf16>, vector<32x64xbf16>, vector<16x64xf32> -> vector<16x64xf32>
      %c0_76 = arith.constant 0 : index
      %c0_77 = arith.constant 0 : index
      %129 = vector.load %arg9[%c0_76, %c0_77] : memref<1x64xf32, #tpu.memory_space<vmem>>, vector<1x64xf32>
      %130 = vector.broadcast %129 : vector<1x64xf32> to vector<16x64xf32>
      %131 = arith.addf %128, %130 : vector<16x64xf32>
      %132 = arith.truncf %131 : vector<16x64xf32> to vector<16x64xbf16>
      %c0_78 = arith.constant 0 : index
      %c0_79 = arith.constant 0 : index
      %133 = vector.load %arg13[%c0_78, %c0_79] : memref<16x64xbf16, #tpu.memory_space<vmem>>, vector<16x64xbf16>
      tpu.vector_store %arg13[%c0_78, %c0_79], %132 {strides = array<i32>} : memref<16x64xbf16, #tpu.memory_space<vmem>>, vector<16x64xbf16>,
    } else {
    }
    %c0 = arith.constant 0 : index
    %c0_1 = arith.constant 0 : index
    %c0_2 = arith.constant 0 : index
    %3 = vector.load %arg2[%c0, %c0_1, %c0_2] : memref<1x8x32xbf16, #tpu.memory_space<vmem>>, vector<1x8x32xbf16>
    %4 = vector.shape_cast %3 : vector<1x8x32xbf16> to vector<8x32xbf16>
    %c0_3 = arith.constant 0 : index
    %c0_4 = arith.constant 0 : index
    %5 = vector.load %arg5[%c0_3, %c0_4] : memref<32x32xbf16, #tpu.memory_space<vmem>>, vector<32x32xbf16>
    %cst = arith.constant dense<0.000000e+00> : vector<8x32xf32>
    %6 = tpu.matmul %4, %5, %cst {dimension_numbers = #tpu.dot_dimension_numbers<[1], [0], [0], [1], [0, 0, 1, 1], [], []>} : vector<8x32xbf16>, vector<32x32xbf16>, vector<8x32xf32> -> vector<8x32xf32>
    %c0_5 = arith.constant 0 : index
    %c0_6 = arith.constant 0 : index
    %7 = vector.load %arg8[%c0_5, %c0_6] : memref<1x32xf32, #tpu.memory_space<vmem>>, vector<1x32xf32>
    %8 = vector.broadcast %7 : vector<1x32xf32> to vector<8x32xf32>
    %9 = arith.addf %6, %8 : vector<8x32xf32>
    %cst_7 = arith.constant 0.353553385 : f32
    %10 = vector.broadcast %cst_7 : f32 to vector<8x32xf32>
    %11 = arith.mulf %9, %10 : vector<8x32xf32>
    %12 = arith.truncf %11 : vector<8x32xf32> to vector<8x32xbf16>
    %c0_8 = arith.constant 0 : index
    %c0_9 = arith.constant 0 : index
    %13 = vector.load %arg13[%c0_8, %c0_9] : memref<16x64xbf16, #tpu.memory_space<vmem>>, vector<16x32xbf16>
    %c0_10 = arith.constant 0 : index
    %c32 = arith.constant 32 : index
    %14 = vector.load %arg13[%c0_10, %c32] : memref<16x64xbf16, #tpu.memory_space<vmem>>, vector<16x32xbf16>
    %cst_11 = arith.constant 0.000000e+00 : f32
    %15 = vector.broadcast %cst_11 : f32 to vector<1x8x16xf32>
    %c0_12 = arith.constant 0 : index
    %c0_13 = arith.constant 0 : index
    %c0_14 = arith.constant 0 : index
    %16 = vector.load %arg12[%c0_12, %c0_13, %c0_14] : memref<1x8x16xf32, #tpu.memory_space<vmem>>, vector<1x8x16xf32>
    tpu.vector_store %arg12[%c0_12, %c0_13, %c0_14], %15 {strides = array<i32>} : memref<1x8x16xf32, #tpu.memory_space<vmem>>, vector<1x8x16xf32>,
    %17 = vector.extract_strided_slice %12 {offsets = [0, 0], sizes = [8, 8], strides = [1, 1]} : vector<8x32xbf16> to vector<8x8xbf16>
    %18 = vector.extract_strided_slice %13 {offsets = [0, 0], sizes = [16, 8], strides = [1, 1]} : vector<16x32xbf16> to vector<16x8xbf16>
    %19 = vector.extract_strided_slice %14 {offsets = [0, 0], sizes = [16, 8], strides = [1, 1]} : vector<16x32xbf16> to vector<16x8xbf16>
    %cst_15 = arith.constant dense<0.000000e+00> : vector<8x16xf32>
    %20 = tpu.matmul %17, %18, %cst_15 {dimension_numbers = #tpu.dot_dimension_numbers<[1], [1], [0], [0], [0, 0, 1, 0], [], []>} : vector<8x8xbf16>, vector<16x8xbf16>, vector<8x16xf32> -> vector<8x16xf32>
    %cst_16 = arith.constant dense<0xFF800000> : vector<8xf32>
    %21 = vector.multi_reduction <maximumf>, %20, %cst_16 [1] : vector<8x16xf32> to vector<8xf32>
    %22 = vector.shape_cast %21 : vector<8xf32> to vector<8x1xf32>
    %23 = vector.broadcast %22 : vector<8x1xf32> to vector<8x16xf32>
    %24 = arith.subf %20, %23 : vector<8x16xf32>
    %25 = math.exp %24 : vector<8x16xf32>
    %cst_17 = arith.constant dense<0.000000e+00> : vector<8xf32>
    %26 = vector.multi_reduction <add>, %25, %cst_17 [1] : vector<8x16xf32> to vector<8xf32>
    %27 = vector.shape_cast %26 : vector<8xf32> to vector<8x1xf32>
    %28 = tpu.reciprocal %27 {approx = true} : vector<8x1xf32> -> vector<8x1xf32>
    %29 = vector.broadcast %28 : vector<8x1xf32> to vector<8x16xf32>
    %30 = arith.mulf %25, %29 : vector<8x16xf32>
    %c0_18 = arith.constant 0 : index
    %c0_19 = arith.constant 0 : index
    %c0_20 = arith.constant 0 : index
    %31 = vector.load %arg12[%c0_18, %c0_19, %c0_20] : memref<1x8x16xf32, #tpu.memory_space<vmem>>, vector<1x8x16xf32>
    %32 = vector.shape_cast %31 : vector<1x8x16xf32> to vector<8x16xf32>
    %33 = arith.addf %32, %30 : vector<8x16xf32>
    %c0_21 = arith.constant 0 : index
    %c0_22 = arith.constant 0 : index
    %c0_23 = arith.constant 0 : index
    %34 = vector.load %arg12[%c0_21, %c0_22, %c0_23] : memref<1x8x16xf32, #tpu.memory_space<vmem>>, vector<1x8x16xf32>
    %35 = vector.shape_cast %34 : vector<1x8x16xf32> to vector<8x16xf32>
    %36 = vector.shape_cast %33 : vector<8x16xf32> to vector<1x8x16xf32>
    tpu.vector_store %arg12[%c0_21, %c0_22, %c0_23], %36 {strides = array<i32>} : memref<1x8x16xf32, #tpu.memory_space<vmem>>, vector<1x8x16xf32>,
    %37 = arith.truncf %30 : vector<8x16xf32> to vector<8x16xbf16>
    %cst_24 = arith.constant dense<0.000000e+00> : vector<8x8xf32>
    %38 = tpu.matmul %37, %19, %cst_24 {dimension_numbers = #tpu.dot_dimension_numbers<[1], [0], [0], [1], [0, 0, 1, 1], [], []>} : vector<8x16xbf16>, vector<16x8xbf16>, vector<8x8xf32> -> vector<8x8xf32>
    %39 = arith.truncf %38 : vector<8x8xf32> to vector<8x8xbf16>
    %40 = vector.extract_strided_slice %12 {offsets = [0, 8], sizes = [8, 8], strides = [1, 1]} : vector<8x32xbf16> to vector<8x8xbf16>
    %41 = vector.extract_strided_slice %13 {offsets = [0, 8], sizes = [16, 8], strides = [1, 1]} : vector<16x32xbf16> to vector<16x8xbf16>
    %42 = vector.extract_strided_slice %14 {offsets = [0, 8], sizes = [16, 8], strides = [1, 1]} : vector<16x32xbf16> to vector<16x8xbf16>
    %cst_25 = arith.constant dense<0.000000e+00> : vector<8x16xf32>
    %43 = tpu.matmul %40, %41, %cst_25 {dimension_numbers = #tpu.dot_dimension_numbers<[1], [1], [0], [0], [0, 0, 1, 0], [], []>} : vector<8x8xbf16>, vector<16x8xbf16>, vector<8x16xf32> -> vector<8x16xf32>
    %cst_26 = arith.constant dense<0xFF800000> : vector<8xf32>
    %44 = vector.multi_reduction <maximumf>, %43, %cst_26 [1] : vector<8x16xf32> to vector<8xf32>
    %45 = vector.shape_cast %44 : vector<8xf32> to vector<8x1xf32>
    %46 = vector.broadcast %45 : vector<8x1xf32> to vector<8x16xf32>
    %47 = arith.subf %43, %46 : vector<8x16xf32>
    %48 = math.exp %47 : vector<8x16xf32>
    %cst_27 = arith.constant dense<0.000000e+00> : vector<8xf32>
    %49 = vector.multi_reduction <add>, %48, %cst_27 [1] : vector<8x16xf32> to vector<8xf32>
    %50 = vector.shape_cast %49 : vector<8xf32> to vector<8x1xf32>
    %51 = tpu.reciprocal %50 {approx = true} : vector<8x1xf32> -> vector<8x1xf32>
    %52 = vector.broadcast %51 : vector<8x1xf32> to vector<8x16xf32>
    %53 = arith.mulf %48, %52 : vector<8x16xf32>
    %c0_28 = arith.constant 0 : index
    %c0_29 = arith.constant 0 : index
    %c0_30 = arith.constant 0 : index
    %54 = vector.load %arg12[%c0_28, %c0_29, %c0_30] : memref<1x8x16xf32, #tpu.memory_space<vmem>>, vector<1x8x16xf32>
    %55 = vector.shape_cast %54 : vector<1x8x16xf32> to vector<8x16xf32>
    %56 = arith.addf %55, %53 : vector<8x16xf32>
    %c0_31 = arith.constant 0 : index
    %c0_32 = arith.constant 0 : index
    %c0_33 = arith.constant 0 : index
    %57 = vector.load %arg12[%c0_31, %c0_32, %c0_33] : memref<1x8x16xf32, #tpu.memory_space<vmem>>, vector<1x8x16xf32>
    %58 = vector.shape_cast %57 : vector<1x8x16xf32> to vector<8x16xf32>
    %59 = vector.shape_cast %56 : vector<8x16xf32> to vector<1x8x16xf32>
    tpu.vector_store %arg12[%c0_31, %c0_32, %c0_33], %59 {strides = array<i32>} : memref<1x8x16xf32, #tpu.memory_space<vmem>>, vector<1x8x16xf32>,
    %60 = arith.truncf %53 : vector<8x16xf32> to vector<8x16xbf16>
    %cst_34 = arith.constant dense<0.000000e+00> : vector<8x8xf32>
    %61 = tpu.matmul %60, %42, %cst_34 {dimension_numbers = #tpu.dot_dimension_numbers<[1], [0], [0], [1], [0, 0, 1, 1], [], []>} : vector<8x16xbf16>, vector<16x8xbf16>, vector<8x8xf32> -> vector<8x8xf32>
    %62 = arith.truncf %61 : vector<8x8xf32> to vector<8x8xbf16>
    %63 = vector.extract_strided_slice %12 {offsets = [0, 16], sizes = [8, 8], strides = [1, 1]} : vector<8x32xbf16> to vector<8x8xbf16>
    %64 = vector.extract_strided_slice %13 {offsets = [0, 16], sizes = [16, 8], strides = [1, 1]} : vector<16x32xbf16> to vector<16x8xbf16>
    %65 = vector.extract_strided_slice %14 {offsets = [0, 16], sizes = [16, 8], strides = [1, 1]} : vector<16x32xbf16> to vector<16x8xbf16>
    %cst_35 = arith.constant dense<0.000000e+00> : vector<8x16xf32>
    %66 = tpu.matmul %63, %64, %cst_35 {dimension_numbers = #tpu.dot_dimension_numbers<[1], [1], [0], [0], [0, 0, 1, 0], [], []>} : vector<8x8xbf16>, vector<16x8xbf16>, vector<8x16xf32> -> vector<8x16xf32>
    %cst_36 = arith.constant dense<0xFF800000> : vector<8xf32>
    %67 = vector.multi_reduction <maximumf>, %66, %cst_36 [1] : vector<8x16xf32> to vector<8xf32>
    %68 = vector.shape_cast %67 : vector<8xf32> to vector<8x1xf32>
    %69 = vector.broadcast %68 : vector<8x1xf32> to vector<8x16xf32>
    %70 = arith.subf %66, %69 : vector<8x16xf32>
    %71 = math.exp %70 : vector<8x16xf32>
    %cst_37 = arith.constant dense<0.000000e+00> : vector<8xf32>
    %72 = vector.multi_reduction <add>, %71, %cst_37 [1] : vector<8x16xf32> to vector<8xf32>
    %73 = vector.shape_cast %72 : vector<8xf32> to vector<8x1xf32>
    %74 = tpu.reciprocal %73 {approx = true} : vector<8x1xf32> -> vector<8x1xf32>
    %75 = vector.broadcast %74 : vector<8x1xf32> to vector<8x16xf32>
    %76 = arith.mulf %71, %75 : vector<8x16xf32>
    %c0_38 = arith.constant 0 : index
    %c0_39 = arith.constant 0 : index
    %c0_40 = arith.constant 0 : index
    %77 = vector.load %arg12[%c0_38, %c0_39, %c0_40] : memref<1x8x16xf32, #tpu.memory_space<vmem>>, vector<1x8x16xf32>
    %78 = vector.shape_cast %77 : vector<1x8x16xf32> to vector<8x16xf32>
    %79 = arith.addf %78, %76 : vector<8x16xf32>
    %c0_41 = arith.constant 0 : index
    %c0_42 = arith.constant 0 : index
    %c0_43 = arith.constant 0 : index
    %80 = vector.load %arg12[%c0_41, %c0_42, %c0_43] : memref<1x8x16xf32, #tpu.memory_space<vmem>>, vector<1x8x16xf32>
    %81 = vector.shape_cast %80 : vector<1x8x16xf32> to vector<8x16xf32>
    %82 = vector.shape_cast %79 : vector<8x16xf32> to vector<1x8x16xf32>
    tpu.vector_store %arg12[%c0_41, %c0_42, %c0_43], %82 {strides = array<i32>} : memref<1x8x16xf32, #tpu.memory_space<vmem>>, vector<1x8x16xf32>,
    %83 = arith.truncf %76 : vector<8x16xf32> to vector<8x16xbf16>
    %cst_44 = arith.constant dense<0.000000e+00> : vector<8x8xf32>
    %84 = tpu.matmul %83, %65, %cst_44 {dimension_numbers = #tpu.dot_dimension_numbers<[1], [0], [0], [1], [0, 0, 1, 1], [], []>} : vector<8x16xbf16>, vector<16x8xbf16>, vector<8x8xf32> -> vector<8x8xf32>
    %85 = arith.truncf %84 : vector<8x8xf32> to vector<8x8xbf16>
    %86 = vector.extract_strided_slice %12 {offsets = [0, 24], sizes = [8, 8], strides = [1, 1]} : vector<8x32xbf16> to vector<8x8xbf16>
    %87 = vector.extract_strided_slice %13 {offsets = [0, 24], sizes = [16, 8], strides = [1, 1]} : vector<16x32xbf16> to vector<16x8xbf16>
    %88 = vector.extract_strided_slice %14 {offsets = [0, 24], sizes = [16, 8], strides = [1, 1]} : vector<16x32xbf16> to vector<16x8xbf16>
    %cst_45 = arith.constant dense<0.000000e+00> : vector<8x16xf32>
    %89 = tpu.matmul %86, %87, %cst_45 {dimension_numbers = #tpu.dot_dimension_numbers<[1], [1], [0], [0], [0, 0, 1, 0], [], []>} : vector<8x8xbf16>, vector<16x8xbf16>, vector<8x16xf32> -> vector<8x16xf32>
    %cst_46 = arith.constant dense<0xFF800000> : vector<8xf32>
    %90 = vector.multi_reduction <maximumf>, %89, %cst_46 [1] : vector<8x16xf32> to vector<8xf32>
    %91 = vector.shape_cast %90 : vector<8xf32> to vector<8x1xf32>
    %92 = vector.broadcast %91 : vector<8x1xf32> to vector<8x16xf32>
    %93 = arith.subf %89, %92 : vector<8x16xf32>
    %94 = math.exp %93 : vector<8x16xf32>
    %cst_47 = arith.constant dense<0.000000e+00> : vector<8xf32>
    %95 = vector.multi_reduction <add>, %94, %cst_47 [1] : vector<8x16xf32> to vector<8xf32>
    %96 = vector.shape_cast %95 : vector<8xf32> to vector<8x1xf32>
    %97 = tpu.reciprocal %96 {approx = true} : vector<8x1xf32> -> vector<8x1xf32>
    %98 = vector.broadcast %97 : vector<8x1xf32> to vector<8x16xf32>
    %99 = arith.mulf %94, %98 : vector<8x16xf32>
    %c0_48 = arith.constant 0 : index
    %c0_49 = arith.constant 0 : index
    %c0_50 = arith.constant 0 : index
    %100 = vector.load %arg12[%c0_48, %c0_49, %c0_50] : memref<1x8x16xf32, #tpu.memory_space<vmem>>, vector<1x8x16xf32>
    %101 = vector.shape_cast %100 : vector<1x8x16xf32> to vector<8x16xf32>
    %102 = arith.addf %101, %99 : vector<8x16xf32>
    %c0_51 = arith.constant 0 : index
    %c0_52 = arith.constant 0 : index
    %c0_53 = arith.constant 0 : index
    %103 = vector.load %arg12[%c0_51, %c0_52, %c0_53] : memref<1x8x16xf32, #tpu.memory_space<vmem>>, vector<1x8x16xf32>
    %104 = vector.shape_cast %103 : vector<1x8x16xf32> to vector<8x16xf32>
    %105 = vector.shape_cast %102 : vector<8x16xf32> to vector<1x8x16xf32>
    tpu.vector_store %arg12[%c0_51, %c0_52, %c0_53], %105 {strides = array<i32>} : memref<1x8x16xf32, #tpu.memory_space<vmem>>, vector<1x8x16xf32>,
    %106 = arith.truncf %99 : vector<8x16xf32> to vector<8x16xbf16>
    %cst_54 = arith.constant dense<0.000000e+00> : vector<8x8xf32>
    %107 = tpu.matmul %106, %88, %cst_54 {dimension_numbers = #tpu.dot_dimension_numbers<[1], [0], [0], [1], [0, 0, 1, 1], [], []>} : vector<8x16xbf16>, vector<16x8xbf16>, vector<8x8xf32> -> vector<8x8xf32>
    %108 = arith.truncf %107 : vector<8x8xf32> to vector<8x8xbf16>
    %109 = tpu.concatenate %39, %62, %85, %108 in 1 : vector<8x8xbf16>, vector<8x8xbf16>, vector<8x8xbf16>, vector<8x8xbf16> -> vector<8x32xbf16>
    %c0_55 = arith.constant 0 : index
    %c0_56 = arith.constant 0 : index
    %110 = vector.load %arg7[%c0_55, %c0_56] : memref<32x32xbf16, #tpu.memory_space<vmem>>, vector<32x32xbf16>
    %cst_57 = arith.constant dense<0.000000e+00> : vector<8x32xf32>
    %111 = tpu.matmul %109, %110, %cst_57 {dimension_numbers = #tpu.dot_dimension_numbers<[1], [0], [0], [1], [0, 0, 1, 1], [], []>} : vector<8x32xbf16>, vector<32x32xbf16>, vector<8x32xf32> -> vector<8x32xf32>
    %c0_58 = arith.constant 0 : index
    %c0_59 = arith.constant 0 : index
    %112 = vector.load %arg10[%c0_58, %c0_59] : memref<1x32xf32, #tpu.memory_space<vmem>>, vector<1x32xf32>
    %113 = vector.broadcast %112 : vector<1x32xf32> to vector<8x32xf32>
    %114 = arith.addf %111, %113 : vector<8x32xf32>
    %c0_60 = arith.constant 0 : index
    %c0_61 = arith.constant 0 : index
    %c0_62 = arith.constant 0 : index
    %115 = vector.load %arg11[%c0_60, %c0_61, %c0_62] : memref<1x8x32xf32, #tpu.memory_space<vmem>>, vector<1x8x32xf32>
    %116 = vector.shape_cast %115 : vector<1x8x32xf32> to vector<8x32xf32>
    %117 = vector.shape_cast %114 : vector<8x32xf32> to vector<1x8x32xf32>
    tpu.vector_store %arg11[%c0_60, %c0_61, %c0_62], %117 {strides = array<i32>} : memref<1x8x32xf32, #tpu.memory_space<vmem>>, vector<1x8x32xf32>,
    %c0_63 = arith.constant 0 : index
    %c0_64 = arith.constant 0 : index
    %c0_65 = arith.constant 0 : index
    %118 = vector.load %arg12[%c0_63, %c0_64, %c0_65] : memref<1x8x16xf32, #tpu.memory_space<vmem>>, vector<1x8x16xf32>
    %119 = vector.shape_cast %118 : vector<1x8x16xf32> to vector<8x16xf32>
    %cst_66 = arith.constant 2.500000e-01 : f32
    %120 = vector.broadcast %cst_66 : f32 to vector<8x16xf32>
    %121 = arith.mulf %119, %120 : vector<8x16xf32>
    %c0_67 = arith.constant 0 : index
    %c0_68 = arith.constant 0 : index
    %c0_69 = arith.constant 0 : index
    %122 = vector.load %arg12[%c0_67, %c0_68, %c0_69] : memref<1x8x16xf32, #tpu.memory_space<vmem>>, vector<1x8x16xf32>
    %123 = vector.shape_cast %122 : vector<1x8x16xf32> to vector<8x16xf32>
    %124 = vector.shape_cast %121 : vector<8x16xf32> to vector<1x8x16xf32>
    tpu.vector_store %arg12[%c0_67, %c0_68, %c0_69], %124 {strides = array<i32>} : memref<1x8x16xf32, #tpu.memory_space<vmem>>, vector<1x8x16xf32>,
    return
  }
  func.func @transform_0(%arg0: i32, %arg1: i32) -> (i32, i32, i32) {
    %c0_i32 = arith.constant 0 : i32
    %c0_i32_0 = arith.constant 0 : i32
    return %arg0, %arg1, %c0_i32 : i32, i32, i32
  }
  func.func @transform_1(%arg0: i32, %arg1: i32) -> (i32, i32, i32) {
    %c0_i32 = arith.constant 0 : i32
    %c0_i32_0 = arith.constant 0 : i32
    %c0_i32_1 = arith.constant 0 : i32
    return %arg0, %c0_i32, %c0_i32_0 : i32, i32, i32
  }
  func.func @transform_2(%arg0: i32, %arg1: i32) -> (i32, i32, i32) {
    %c0_i32 = arith.constant 0 : i32
    %c0_i32_0 = arith.constant 0 : i32
    %c0_i32_1 = arith.constant 0 : i32
    return %arg0, %c0_i32, %c0_i32_0 : i32, i32, i32
  }
  func.func @transform_3(%arg0: i32, %arg1: i32) -> (i32, i32) {
    %c0_i32 = arith.constant 0 : i32
    %c0_i32_0 = arith.constant 0 : i32
    %c0_i32_1 = arith.constant 0 : i32
    return %c0_i32, %c0_i32_0 : i32, i32
  }
  func.func @transform_4(%arg0: i32, %arg1: i32) -> (i32, i32) {
    %c0_i32 = arith.constant 0 : i32
    %c0_i32_0 = arith.constant 0 : i32
    %c0_i32_1 = arith.constant 0 : i32
    return %c0_i32, %c0_i32_0 : i32, i32
  }
  func.func @transform_5(%arg0: i32, %arg1: i32) -> (i32, i32) {
    %c0_i32 = arith.constant 0 : i32
    %c0_i32_0 = arith.constant 0 : i32
    %c0_i32_1 = arith.constant 0 : i32
    return %c0_i32, %c0_i32_0 : i32, i32
  }
  func.func @transform_6(%arg0: i32, %arg1: i32) -> (i32, i32) {
    %c0_i32 = arith.constant 0 : i32
    %c0_i32_0 = arith.constant 0 : i32
    %c0_i32_1 = arith.constant 0 : i32
    return %c0_i32, %c0_i32_0 : i32, i32
  }
  func.func @transform_7(%arg0: i32, %arg1: i32) -> (i32, i32) {
    %c0_i32 = arith.constant 0 : i32
    %c0_i32_0 = arith.constant 0 : i32
    %c0_i32_1 = arith.constant 0 : i32
    return %c0_i32, %c0_i32_0 : i32, i32
  }
  func.func @transform_8(%arg0: i32, %arg1: i32) -> (i32, i32) {
    %c0_i32 = arith.constant 0 : i32
    %c0_i32_0 = arith.constant 0 : i32
    %c0_i32_1 = arith.constant 0 : i32
    return %c0_i32, %c0_i32_0 : i32, i32
  }
  func.func @transform_9(%arg0: i32, %arg1: i32) -> (i32, i32, i32) {
    %c0_i32 = arith.constant 0 : i32
    %c0_i32_0 = arith.constant 0 : i32
    return %arg0, %arg1, %c0_i32 : i32, i32, i32
  }
  func.func @transform_10(%arg0: i32, %arg1: i32) -> (i32, i32, i32) {
    %c0_i32 = arith.constant 0 : i32
    %c0_i32_0 = arith.constant 0 : i32
    return %arg0, %arg1, %c0_i32 : i32, i32, i32
  }
}

module attributes {stable_mosaic.version = 11 : i64} {
  func.func @mha_kernel(%arg0: i32, %arg1: i32, %arg2: memref<1x8x32xbf16, #tpu.memory_space<vmem>>, %arg3: memref<1x16x32xbf16, #tpu.memory_space<vmem>>, %arg4: memref<1x16x32xbf16, #tpu.memory_space<vmem>>, %arg5: memref<32x32xbf16, #tpu.memory_space<vmem>>, %arg6: memref<32x64xbf16, #tpu.memory_space<vmem>>, %arg7: memref<32x32xbf16, #tpu.memory_space<vmem>>, %arg8: memref<1x32xf32, #tpu.memory_space<vmem>>, %arg9: memref<1x64xf32, #tpu.memory_space<vmem>>, %arg10: memref<1x32xf32, #tpu.memory_space<vmem>>, %arg11: memref<1x8x32xf32, #tpu.memory_space<vmem>>, %arg12: memref<1x8x16xf32, #tpu.memory_space<vmem>>, %arg13: memref<16x64xbf16, #tpu.memory_space<vmem>>) attributes {dimension_semantics = [#tpu.dimension_semantics<parallel>, #tpu.dimension_semantics<arbitrary>], iteration_bounds = array<i64: 2, 2>, scalar_prefetch = 0 : i64, scratch_operands = 1 : i64, tpu.core_type = #tpu.core_type<tc>, window_params = [{transform_indices = @transform_0, window_bounds = array<i64: 1, 8, 32>}, {transform_indices = @transform_1, window_bounds = array<i64: 1, 16, 32>}, {transform_indices = @transform_2, window_bounds = array<i64: 1, 16, 32>}, {pipeline_mode = #tpu.pipeline_mode<synchronous>, transform_indices = @transform_3, window_bounds = array<i64: 32, 32>}, {pipeline_mode = #tpu.pipeline_mode<synchronous>, transform_indices = @transform_4, window_bounds = array<i64: 32, 64>}, {pipeline_mode = #tpu.pipeline_mode<synchronous>, transform_indices = @transform_5, window_bounds = array<i64: 32, 32>}, {pipeline_mode = #tpu.pipeline_mode<synchronous>, transform_indices = @transform_6, window_bounds = array<i64: 1, 32>}, {pipeline_mode = #tpu.pipeline_mode<synchronous>, transform_indices = @transform_7, window_bounds = array<i64: 1, 64>}, {pipeline_mode = #tpu.pipeline_mode<synchronous>, transform_indices = @transform_8, window_bounds = array<i64: 1, 32>}, {transform_indices = @transform_9, window_bounds = array<i64: 1, 8, 32>}, {transform_indices = @transform_10, window_bounds = array<i64: 1, 8, 16>}]} {
    %c0_i32 = arith.constant 0 : i32
    %0 = arith.cmpi eq, %arg1, %c0_i32 : i32
    %1 = arith.extui %0 : i1 to i32
    %c0_i32_0 = arith.constant 0 : i32
    %2 = arith.cmpi ne, %1, %c0_i32_0 : i32
    scf.if %2 {
      %c0_70 = arith.constant 0 : index
      %c0_71 = arith.constant 0 : index
      %c0_72 = arith.constant 0 : index
      %125 = vector.load %arg3[%c0_70, %c0_71, %c0_72] : memref<1x16x32xbf16, #tpu.memory_space<vmem>>, vector<1x16x32xbf16>
      %126 = vector.shape_cast %125 : vector<1x16x32xbf16> to vector<16x32xbf16>
      %c0_73 = arith.constant 0 : index
      %c0_74 = arith.constant 0 : index
      %127 = vector.load %arg6[%c0_73, %c0_74] : memref<32x64xbf16, #tpu.memory_space<vmem>>, vector<32x64xbf16>
      %cst_75 = arith.constant dense<0.000000e+00> : vector<16x64xf32>
      %128 = tpu.matmul %126, %127, %cst_75 {dimension_numbers = #tpu.dot_dimension_numbers<[1], [0], [0], [1], [0, 0, 1, 1], [], []>} : vector<16x32xbf16>, vector<32x64xbf16>, vector<16x64xf32> -> vector<16x64xf32>
      %c0_76 = arith.constant 0 : index
      %c0_77 = arith.constant 0 : index
      %129 = vector.load %arg9[%c0_76, %c0_77] : memref<1x64xf32, #tpu.memory_space<vmem>>, vector<1x64xf32>
      %130 = vector.broadcast %129 : vector<1x64xf32> to vector<16x64xf32>
      %131 = arith.addf %128, %130 : vector<16x64xf32>
      %132 = arith.truncf %131 : vector<16x64xf32> to vector<16x64xbf16>
      %c0_78 = arith.constant 0 : index
      %c0_79 = arith.constant 0 : index
      %133 = vector.load %arg13[%c0_78, %c0_79] : memref<16x64xbf16, #tpu.memory_space<vmem>>, vector<16x64xbf16>
      tpu.vector_store %arg13[%c0_78, %c0_79], %132 {strides = array<i32>} : memref<16x64xbf16, #tpu.memory_space<vmem>>, vector<16x64xbf16>,
    } else {
    }
    %c0 = arith.constant 0 : index
    %c0_1 = arith.constant 0 : index
    %c0_2 = arith.constant 0 : index
    %3 = vector.load %arg2[%c0, %c0_1, %c0_2] : memref<1x8x32xbf16, #tpu.memory_space<vmem>>, vector<1x8x32xbf16>
    %4 = vector.shape_cast %3 : vector<1x8x32xbf16> to vector<8x32xbf16>
    %c0_3 = arith.constant 0 : index
    %c0_4 = arith.constant 0 : index
    %5 = vector.load %arg5[%c0_3, %c0_4] : memref<32x32xbf16, #tpu.memory_space<vmem>>, vector<32x32xbf16>
    %cst = arith.constant dense<0.000000e+00> : vector<8x32xf32>
    %6 = tpu.matmul %4, %5, %cst {dimension_numbers = #tpu.dot_dimension_numbers<[1], [0], [0], [1], [0, 0, 1, 1], [], []>} : vector<8x32xbf16>, vector<32x32xbf16>, vector<8x32xf32> -> vector<8x32xf32>
    %c0_5 = arith.constant 0 : index
    %c0_6 = arith.constant 0 : index
    %7 = vector.load %arg8[%c0_5, %c0_6] : memref<1x32xf32, #tpu.memory_space<vmem>>, vector<1x32xf32>
    %8 = vector.broadcast %7 : vector<1x32xf32> to vector<8x32xf32>
    %9 = arith.addf %6, %8 : vector<8x32xf32>
    %cst_7 = arith.constant 0.353553385 : f32
    %10 = vector.broadcast %cst_7 : f32 to vector<8x32xf32>
    %11 = arith.mulf %9, %10 : vector<8x32xf32>
    %12 = arith.truncf %11 : vector<8x32xf32> to vector<8x32xbf16>
    %c0_8 = arith.constant 0 : index
    %c0_9 = arith.constant 0 : index
    %13 = vector.load %arg13[%c0_8, %c0_9] : memref<16x64xbf16, #tpu.memory_space<vmem>>, vector<16x32xbf16>
    %c0_10 = arith.constant 0 : index
    %c32 = arith.constant 32 : index
    %14 = vector.load %arg13[%c0_10, %c32] : memref<16x64xbf16, #tpu.memory_space<vmem>>, vector<16x32xbf16>
    %cst_11 = arith.constant 0.000000e+00 : f32
    %15 = vector.broadcast %cst_11 : f32 to vector<1x8x16xf32>
    %c0_12 = arith.constant 0 : index
    %c0_13 = arith.constant 0 : index
    %c0_14 = arith.constant 0 : index
    %16 = vector.load %arg12[%c0_12, %c0_13, %c0_14] : memref<1x8x16xf32, #tpu.memory_space<vmem>>, vector<1x8x16xf32>
    tpu.vector_store %arg12[%c0_12, %c0_13, %c0_14], %15 {strides = array<i32>} : memref<1x8x16xf32, #tpu.memory_space<vmem>>, vector<1x8x16xf32>,
    %17 = vector.extract_strided_slice %12 {offsets = [0, 0], sizes = [8, 8], strides = [1, 1]} : vector<8x32xbf16> to vector<8x8xbf16>
    %18 = vector.extract_strided_slice %13 {offsets = [0, 0], sizes = [16, 8], strides = [1, 1]} : vector<16x32xbf16> to vector<16x8xbf16>
    %19 = vector.extract_strided_slice %14 {offsets = [0, 0], sizes = [16, 8], strides = [1, 1]} : vector<16x32xbf16> to vector<16x8xbf16>
    %cst_15 = arith.constant dense<0.000000e+00> : vector<8x16xf32>
    %20 = tpu.matmul %17, %18, %cst_15 {dimension_numbers = #tpu.dot_dimension_numbers<[1], [1], [0], [0], [0, 0, 1, 0], [], []>} : vector<8x8xbf16>, vector<16x8xbf16>, vector<8x16xf32> -> vector<8x16xf32>
    %cst_16 = arith.constant dense<0xFF800000> : vector<8xf32>
    %21 = vector.multi_reduction <maximumf>, %20, %cst_16 [1] : vector<8x16xf32> to vector<8xf32>
    %22 = vector.shape_cast %21 : vector<8xf32> to vector<8x1xf32>
    %23 = vector.broadcast %22 : vector<8x1xf32> to vector<8x16xf32>
    %24 = arith.subf %20, %23 : vector<8x16xf32>
    %25 = math.exp %24 : vector<8x16xf32>
    %cst_17 = arith.constant dense<0.000000e+00> : vector<8xf32>
    %26 = vector.multi_reduction <add>, %25, %cst_17 [1] : vector<8x16xf32> to vector<8xf32>
    %27 = vector.shape_cast %26 : vector<8xf32> to vector<8x1xf32>
    %28 = tpu.reciprocal %27 {approx = true} : vector<8x1xf32> -> vector<8x1xf32>
    %29 = vector.broadcast %28 : vector<8x1xf32> to vector<8x16xf32>
    %30 = arith.mulf %25, %29 : vector<8x16xf32>
    %c0_18 = arith.constant 0 : index
    %c0_19 = arith.constant 0 : index
    %c0_20 = arith.constant 0 : index
    %31 = vector.load %arg12[%c0_18, %c0_19, %c0_20] : memref<1x8x16xf32, #tpu.memory_space<vmem>>, vector<1x8x16xf32>
    %32 = vector.shape_cast %31 : vector<1x8x16xf32> to vector<8x16xf32>
    %33 = arith.addf %32, %30 : vector<8x16xf32>
    %c0_21 = arith.constant 0 : index
    %c0_22 = arith.constant 0 : index
    %c0_23 = arith.constant 0 : index
    %34 = vector.load %arg12[%c0_21, %c0_22, %c0_23] : memref<1x8x16xf32, #tpu.memory_space<vmem>>, vector<1x8x16xf32>
    %35 = vector.shape_cast %34 : vector<1x8x16xf32> to vector<8x16xf32>
    %36 = vector.shape_cast %33 : vector<8x16xf32> to vector<1x8x16xf32>
    tpu.vector_store %arg12[%c0_21, %c0_22, %c0_23], %36 {strides = array<i32>} : memref<1x8x16xf32, #tpu.memory_space<vmem>>, vector<1x8x16xf32>,
    %37 = arith.truncf %30 : vector<8x16xf32> to vector<8x16xbf16>
    %cst_24 = arith.constant dense<0.000000e+00> : vector<8x8xf32>
    %38 = tpu.matmul %37, %19, %cst_24 {dimension_numbers = #tpu.dot_dimension_numbers<[1], [0], [0], [1], [0, 0, 1, 1], [], []>} : vector<8x16xbf16>, vector<16x8xbf16>, vector<8x8xf32> -> vector<8x8xf32>
    %39 = arith.truncf %38 : vector<8x8xf32> to vector<8x8xbf16>
    %40 = vector.extract_strided_slice %12 {offsets = [0, 8], sizes = [8, 8], strides = [1, 1]} : vector<8x32xbf16> to vector<8x8xbf16>
    %41 = vector.extract_strided_slice %13 {offsets = [0, 8], sizes = [16, 8], strides = [1, 1]} : vector<16x32xbf16> to vector<16x8xbf16>
    %42 = vector.extract_strided_slice %14 {offsets = [0, 8], sizes = [16, 8], strides = [1, 1]} : vector<16x32xbf16> to vector<16x8xbf16>
    %cst_25 = arith.constant dense<0.000000e+00> : vector<8x16xf32>
    %43 = tpu.matmul %40, %41, %cst_25 {dimension_numbers = #tpu.dot_dimension_numbers<[1], [1], [0], [0], [0, 0, 1, 0], [], []>} : vector<8x8xbf16>, vector<16x8xbf16>, vector<8x16xf32> -> vector<8x16xf32>
    %cst_26 = arith.constant dense<0xFF800000> : vector<8xf32>
    %44 = vector.multi_reduction <maximumf>, %43, %cst_26 [1] : vector<8x16xf32> to vector<8xf32>
    %45 = vector.shape_cast %44 : vector<8xf32> to vector<8x1xf32>
    %46 = vector.broadcast %45 : vector<8x1xf32> to vector<8x16xf32>
    %47 = arith.subf %43, %46 : vector<8x16xf32>
    %48 = math.exp %47 : vector<8x16xf32>
    %cst_27 = arith.constant dense<0.000000e+00> : vector<8xf32>
    %49 = vector.multi_reduction <add>, %48, %cst_27 [1] : vector<8x16xf32> to vector<8xf32>
    %50 = vector.shape_cast %49 : vector<8xf32> to vector<8x1xf32>
    %51 = tpu.reciprocal %50 {approx = true} : vector<8x1xf32> -> vector<8x1xf32>
    %52 = vector.broadcast %51 : vector<8x1xf32> to vector<8x16xf32>
    %53 = arith.mulf %48, %52 : vector<8x16xf32>
    %c0_28 = arith.constant 0 : index
    %c0_29 = arith.constant 0 : index
    %c0_30 = arith.constant 0 : index
    %54 = vector.load %arg12[%c0_28, %c0_29, %c0_30] : memref<1x8x16xf32, #tpu.memory_space<vmem>>, vector<1x8x16xf32>
    %55 = vector.shape_cast %54 : vector<1x8x16xf32> to vector<8x16xf32>
    %56 = arith.addf %55, %53 : vector<8x16xf32>
    %c0_31 = arith.constant 0 : index
    %c0_32 = arith.constant 0 : index
    %c0_33 = arith.constant 0 : index
    %57 = vector.load %arg12[%c0_31, %c0_32, %c0_33] : memref<1x8x16xf32, #tpu.memory_space<vmem>>, vector<1x8x16xf32>
    %58 = vector.shape_cast %57 : vector<1x8x16xf32> to vector<8x16xf32>
    %59 = vector.shape_cast %56 : vector<8x16xf32> to vector<1x8x16xf32>
    tpu.vector_store %arg12[%c0_31, %c0_32, %c0_33], %59 {strides = array<i32>} : memref<1x8x16xf32, #tpu.memory_space<vmem>>, vector<1x8x16xf32>,
    %60 = arith.truncf %53 : vector<8x16xf32> to vector<8x16xbf16>
    %cst_34 = arith.constant dense<0.000000e+00> : vector<8x8xf32>
    %61 = tpu.matmul %60, %42, %cst_34 {dimension_numbers = #tpu.dot_dimension_numbers<[1], [0], [0], [1], [0, 0, 1, 1], [], []>} : vector<8x16xbf16>, vector<16x8xbf16>, vector<8x8xf32> -> vector<8x8xf32>
    %62 = arith.truncf %61 : vector<8x8xf32> to vector<8x8xbf16>
    %63 = vector.extract_strided_slice %12 {offsets = [0, 16], sizes = [8, 8], strides = [1, 1]} : vector<8x32xbf16> to vector<8x8xbf16>
    %64 = vector.extract_strided_slice %13 {offsets = [0, 16], sizes = [16, 8], strides = [1, 1]} : vector<16x32xbf16> to vector<16x8xbf16>
    %65 = vector.extract_strided_slice %14 {offsets = [0, 16], sizes = [16, 8], strides = [1, 1]} : vector<16x32xbf16> to vector<16x8xbf16>
    %cst_35 = arith.constant dense<0.000000e+00> : vector<8x16xf32>
    %66 = tpu.matmul %63, %64, %cst_35 {dimension_numbers = #tpu.dot_dimension_numbers<[1], [1], [0], [0], [0, 0, 1, 0], [], []>} : vector<8x8xbf16>, vector<16x8xbf16>, vector<8x16xf32> -> vector<8x16xf32>
    %cst_36 = arith.constant dense<0xFF800000> : vector<8xf32>
    %67 = vector.multi_reduction <maximumf>, %66, %cst_36 [1] : vector<8x16xf32> to vector<8xf32>
    %68 = vector.shape_cast %67 : vector<8xf32> to vector<8x1xf32>
    %69 = vector.broadcast %68 : vector<8x1xf32> to vector<8x16xf32>
    %70 = arith.subf %66, %69 : vector<8x16xf32>
    %71 = math.exp %70 : vector<8x16xf32>
    %cst_37 = arith.constant dense<0.000000e+00> : vector<8xf32>
    %72 = vector.multi_reduction <add>, %71, %cst_37 [1] : vector<8x16xf32> to vector<8xf32>
    %73 = vector.shape_cast %72 : vector<8xf32> to vector<8x1xf32>
    %74 = tpu.reciprocal %73 {approx = true} : vector<8x1xf32> -> vector<8x1xf32>
    %75 = vector.broadcast %74 : vector<8x1xf32> to vector<8x16xf32>
    %76 = arith.mulf %71, %75 : vector<8x16xf32>
    %c0_38 = arith.constant 0 : index
    %c0_39 = arith.constant 0 : index
    %c0_40 = arith.constant 0 : index
    %77 = vector.load %arg12[%c0_38, %c0_39, %c0_40] : memref<1x8x16xf32, #tpu.memory_space<vmem>>, vector<1x8x16xf32>
    %78 = vector.shape_cast %77 : vector<1x8x16xf32> to vector<8x16xf32>
    %79 = arith.addf %78, %76 : vector<8x16xf32>
    %c0_41 = arith.constant 0 : index
    %c0_42 = arith.constant 0 : index
    %c0_43 = arith.constant 0 : index
    %80 = vector.load %arg12[%c0_41, %c0_42, %c0_43] : memref<1x8x16xf32, #tpu.memory_space<vmem>>, vector<1x8x16xf32>
    %81 = vector.shape_cast %80 : vector<1x8x16xf32> to vector<8x16xf32>
    %82 = vector.shape_cast %79 : vector<8x16xf32> to vector<1x8x16xf32>
    tpu.vector_store %arg12[%c0_41, %c0_42, %c0_43], %82 {strides = array<i32>} : memref<1x8x16xf32, #tpu.memory_space<vmem>>, vector<1x8x16xf32>,
    %83 = arith.truncf %76 : vector<8x16xf32> to vector<8x16xbf16>
    %cst_44 = arith.constant dense<0.000000e+00> : vector<8x8xf32>
    %84 = tpu.matmul %83, %65, %cst_44 {dimension_numbers = #tpu.dot_dimension_numbers<[1], [0], [0], [1], [0, 0, 1, 1], [], []>} : vector<8x16xbf16>, vector<16x8xbf16>, vector<8x8xf32> -> vector<8x8xf32>
    %85 = arith.truncf %84 : vector<8x8xf32> to vector<8x8xbf16>
    %86 = vector.extract_strided_slice %12 {offsets = [0, 24], sizes = [8, 8], strides = [1, 1]} : vector<8x32xbf16> to vector<8x8xbf16>
    %87 = vector.extract_strided_slice %13 {offsets = [0, 24], sizes = [16, 8], strides = [1, 1]} : vector<16x32xbf16> to vector<16x8xbf16>
    %88 = vector.extract_strided_slice %14 {offsets = [0, 24], sizes = [16, 8], strides = [1, 1]} : vector<16x32xbf16> to vector<16x8xbf16>
    %cst_45 = arith.constant dense<0.000000e+00> : vector<8x16xf32>
    %89 = tpu.matmul %86, %87, %cst_45 {dimension_numbers = #tpu.dot_dimension_numbers<[1], [1], [0], [0], [0, 0, 1, 0], [], []>} : vector<8x8xbf16>, vector<16x8xbf16>, vector<8x16xf32> -> vector<8x16xf32>
    %cst_46 = arith.constant dense<0xFF800000> : vector<8xf32>
    %90 = vector.multi_reduction <maximumf>, %89, %cst_46 [1] : vector<8x16xf32> to vector<8xf32>
    %91 = vector.shape_cast %90 : vector<8xf32> to vector<8x1xf32>
    %92 = vector.broadcast %91 : vector<8x1xf32> to vector<8x16xf32>
    %93 = arith.subf %89, %92 : vector<8x16xf32>
    %94 = math.exp %93 : vector<8x16xf32>
    %cst_47 = arith.constant dense<0.000000e+00> : vector<8xf32>
    %95 = vector.multi_reduction <add>, %94, %cst_47 [1] : vector<8x16xf32> to vector<8xf32>
    %96 = vector.shape_cast %95 : vector<8xf32> to vector<8x1xf32>
    %97 = tpu.reciprocal %96 {approx = true} : vector<8x1xf32> -> vector<8x1xf32>
    %98 = vector.broadcast %97 : vector<8x1xf32> to vector<8x16xf32>
    %99 = arith.mulf %94, %98 : vector<8x16xf32>
    %c0_48 = arith.constant 0 : index
    %c0_49 = arith.constant 0 : index
    %c0_50 = arith.constant 0 : index
    %100 = vector.load %arg12[%c0_48, %c0_49, %c0_50] : memref<1x8x16xf32, #tpu.memory_space<vmem>>, vector<1x8x16xf32>
    %101 = vector.shape_cast %100 : vector<1x8x16xf32> to vector<8x16xf32>
    %102 = arith.addf %101, %99 : vector<8x16xf32>
    %c0_51 = arith.constant 0 : index
    %c0_52 = arith.constant 0 : index
    %c0_53 = arith.constant 0 : index
    %103 = vector.load %arg12[%c0_51, %c0_52, %c0_53] : memref<1x8x16xf32, #tpu.memory_space<vmem>>, vector<1x8x16xf32>
    %104 = vector.shape_cast %103 : vector<1x8x16xf32> to vector<8x16xf32>
    %105 = vector.shape_cast %102 : vector<8x16xf32> to vector<1x8x16xf32>
    tpu.vector_store %arg12[%c0_51, %c0_52, %c0_53], %105 {strides = array<i32>} : memref<1x8x16xf32, #tpu.memory_space<vmem>>, vector<1x8x16xf32>,
    %106 = arith.truncf %99 : vector<8x16xf32> to vector<8x16xbf16>
    %cst_54 = arith.constant dense<0.000000e+00> : vector<8x8xf32>
    %107 = tpu.matmul %106, %88, %cst_54 {dimension_numbers = #tpu.dot_dimension_numbers<[1], [0], [0], [1], [0, 0, 1, 1], [], []>} : vector<8x16xbf16>, vector<16x8xbf16>, vector<8x8xf32> -> vector<8x8xf32>
    %108 = arith.truncf %107 : vector<8x8xf32> to vector<8x8xbf16>
    %109 = tpu.concatenate %39, %62, %85, %108 in 1 : vector<8x8xbf16>, vector<8x8xbf16>, vector<8x8xbf16>, vector<8x8xbf16> -> vector<8x32xbf16>
    %c0_55 = arith.constant 0 : index
    %c0_56 = arith.constant 0 : index
    %110 = vector.load %arg7[%c0_55, %c0_56] : memref<32x32xbf16, #tpu.memory_space<vmem>>, vector<32x32xbf16>
    %cst_57 = arith.constant dense<0.000000e+00> : vector<8x32xf32>
    %111 = tpu.matmul %109, %110, %cst_57 {dimension_numbers = #tpu.dot_dimension_numbers<[1], [0], [0], [1], [0, 0, 1, 1], [], []>} : vector<8x32xbf16>, vector<32x32xbf16>, vector<8x32xf32> -> vector<8x32xf32>
    %c0_58 = arith.constant 0 : index
    %c0_59 = arith.constant 0 : index
    %112 = vector.load %arg10[%c0_58, %c0_59] : memref<1x32xf32, #tpu.memory_space<vmem>>, vector<1x32xf32>
    %113 = vector.broadcast %112 : vector<1x32xf32> to vector<8x32xf32>
    %114 = arith.addf %111, %113 : vector<8x32xf32>
    %c0_60 = arith.constant 0 : index
    %c0_61 = arith.constant 0 : index
    %c0_62 = arith.constant 0 : index
    %115 = vector.load %arg11[%c0_60, %c0_61, %c0_62] : memref<1x8x32xf32, #tpu.memory_space<vmem>>, vector<1x8x32xf32>
    %116 = vector.shape_cast %115 : vector<1x8x32xf32> to vector<8x32xf32>
    %117 = vector.shape_cast %114 : vector<8x32xf32> to vector<1x8x32xf32>
    tpu.vector_store %arg11[%c0_60, %c0_61, %c0_62], %117 {strides = array<i32>} : memref<1x8x32xf32, #tpu.memory_space<vmem>>, vector<1x8x32xf32>,
    %c0_63 = arith.constant 0 : index
    %c0_64 = arith.constant 0 : index
    %c0_65 = arith.constant 0 : index
    %118 = vector.load %arg12[%c0_63, %c0_64, %c0_65] : memref<1x8x16xf32, #tpu.memory_space<vmem>>, vector<1x8x16xf32>
    %119 = vector.shape_cast %118 : vector<1x8x16xf32> to vector<8x16xf32>
    %cst_66 = arith.constant 2.500000e-01 : f32
    %120 = vector.broadcast %cst_66 : f32 to vector<8x16xf32>
    %121 = arith.mulf %119, %120 : vector<8x16xf32>
    %c0_67 = arith.constant 0 : index
    %c0_68 = arith.constant 0 : index
    %c0_69 = arith.constant 0 : index
    %122 = vector.load %arg12[%c0_67, %c0_68, %c0_69] : memref<1x8x16xf32, #tpu.memory_space<vmem>>, vector<1x8x16xf32>
    %123 = vector.shape_cast %122 : vector<1x8x16xf32> to vector<8x16xf32>
    %124 = vector.shape_cast %121 : vector<8x16xf32> to vector<1x8x16xf32>
    tpu.vector_store %arg12[%c0_67, %c0_68, %c0_69], %124 {strides = array<i32>} : memref<1x8x16xf32, #tpu.memory_space<vmem>>, vector<1x8x16xf32>,
    return
  }
  func.func @transform_0(%arg0: i32, %arg1: i32) -> (i32, i32, i32) {
    %c0_i32 = arith.constant 0 : i32
    %c0_i32_0 = arith.constant 0 : i32
    return %arg0, %arg1, %c0_i32 : i32, i32, i32
  }
  func.func @transform_1(%arg0: i32, %arg1: i32) -> (i32, i32, i32) {
    %c0_i32 = arith.constant 0 : i32
    %c0_i32_0 = arith.constant 0 : i32
    %c0_i32_1 = arith.constant 0 : i32
    return %arg0, %c0_i32, %c0_i32_0 : i32, i32, i32
  }
  func.func @transform_2(%arg0: i32, %arg1: i32) -> (i32, i32, i32) {
    %c0_i32 = arith.constant 0 : i32
    %c0_i32_0 = arith.constant 0 : i32
    %c0_i32_1 = arith.constant 0 : i32
    return %arg0, %c0_i32, %c0_i32_0 : i32, i32, i32
  }
  func.func @transform_3(%arg0: i32, %arg1: i32) -> (i32, i32) {
    %c0_i32 = arith.constant 0 : i32
    %c0_i32_0 = arith.constant 0 : i32
    %c0_i32_1 = arith.constant 0 : i32
    return %c0_i32, %c0_i32_0 : i32, i32
  }
  func.func @transform_4(%arg0: i32, %arg1: i32) -> (i32, i32) {
    %c0_i32 = arith.constant 0 : i32
    %c0_i32_0 = arith.constant 0 : i32
    %c0_i32_1 = arith.constant 0 : i32
    return %c0_i32, %c0_i32_0 : i32, i32
  }
  func.func @transform_5(%arg0: i32, %arg1: i32) -> (i32, i32) {
    %c0_i32 = arith.constant 0 : i32
    %c0_i32_0 = arith.constant 0 : i32
    %c0_i32_1 = arith.constant 0 : i32
    return %c0_i32, %c0_i32_0 : i32, i32
  }
  func.func @transform_6(%arg0: i32, %arg1: i32) -> (i32, i32) {
    %c0_i32 = arith.constant 0 : i32
    %c0_i32_0 = arith.constant 0 : i32
    %c0_i32_1 = arith.constant 0 : i32
    return %c0_i32, %c0_i32_0 : i32, i32
  }
  func.func @transform_7(%arg0: i32, %arg1: i32) -> (i32, i32) {
    %c0_i32 = arith.constant 0 : i32
    %c0_i32_0 = arith.constant 0 : i32
    %c0_i32_1 = arith.constant 0 : i32
    return %c0_i32, %c0_i32_0 : i32, i32
  }
  func.func @transform_8(%arg0: i32, %arg1: i32) -> (i32, i32) {
    %c0_i32 = arith.constant 0 : i32
    %c0_i32_0 = arith.constant 0 : i32
    %c0_i32_1 = arith.constant 0 : i32
    return %c0_i32, %c0_i32_0 : i32, i32
  }
  func.func @transform_9(%arg0: i32, %arg1: i32) -> (i32, i32, i32) {
    %c0_i32 = arith.constant 0 : i32
    %c0_i32_0 = arith.constant 0 : i32
    return %arg0, %arg1, %c0_i32 : i32, i32, i32
  }
  func.func @transform_10(%arg0: i32, %arg1: i32) -> (i32, i32, i32) {
    %c0_i32 = arith.constant 0 : i32
    %c0_i32_0 = arith.constant 0 : i32
    return %arg0, %arg1, %c0_i32 : i32, i32, i32
  }
}

</mosaic_0001>

<bundles_post_ra>
// kernel: tpu_custom_call.1
= control target key start
LH: loop header
LB: loop body
LE: loop exit
PB: predicated region body
PF: predicated region fallthrough
CT: control target
= control target key end

     0   :  { %s2680_s0 = inlined_call_operand.hbm [shape: bf16[2,16,32], index: 0, kind: input, shape index: {}]   ;;  %s2681_s1 = inlined_call_operand.hbm [shape: bf16[2,16,32], index: 1, kind: input, shape index: {}]   ;;  %s2682_s2 = inlined_call_operand.hbm [shape: bf16[2,16,32], index: 2, kind: input, shape index: {}]   ;;  %s2683_s3 = inlined_call_operand.hbm [shape: bf16[32,32], index: 3, kind: input, shape index: {}]   ;;  %s2684_s4 = inlined_call_operand.hbm [shape: bf16[32,64], index: 4, kind: input, shape index: {}]   ;;  %s2685_s5 = inlined_call_operand.vmem [shape: bf16[32,32], index: 5, kind: input, shape index: {}]   ;;  %s2686_s6 = inlined_call_operand.vmem [shape: f32[1,32], index: 6, kind: input, shape index: {}]   ;;  %s2687_s7 = inlined_call_operand.vmem [shape: f32[1,64], index: 7, kind: input, shape index: {}]   ;;  %s2688_s8 = inlined_call_operand.vmem [shape: f32[1,32], index: 8, kind: input, shape index: {}]   ;;  %s2689_s9 = inlined_call_operand.hbm [shape: f32[2,16,32], index: 9, kind: output, shape index: {0}]   ;;  %s2690_s10 = inlined_call_operand.hbm [shape: f32[2,16,16], index: 10, kind: output, shape index: {1}]  }
   0x1   :  { %2720 = sst [smem:[#allocation30_spill]] %s2681_s1 }
   0x2   :  { %2721 = sst [smem:[#allocation31_spill]] %s2683_s3 }
   0x3   :  { %2722 = sst [smem:[#allocation32_spill]] %s2684_s4 }
   0x4   :  { %2723 = sst [smem:[#allocation33_spill]] %s2685_s5 }
   0x5   :  { %2724 = sst [smem:[#allocation34_spill]] %s2686_s6 }
   0x6   :  { %2725 = sst [smem:[#allocation35_spill]] %s2687_s7 }
   0x7   :  { %2726 = sst [smem:[#allocation36_spill]] %s2688_s8 }
   0x8   :  { %2727 = sst [smem:[#allocation37_spill]] %s2689_s9 }
   0x9   :  { %2728 = sst [smem:[#allocation38_spill]] %s2690_s10 }
   0xa   :  { %16 = vsyncpa [#allocation4], 0 }
   0xb   :  { %18 = vsyncpa [#allocation4 + $0x1], 0 }
   0xc   :  { %19 = vsyncpa [#allocation7], 0 }
   0xd   :  { %21 = vsyncpa [#allocation7 + $0x1], 0 }
   0xe   :  { %22 = vsyncpa [#allocation10], 0 }
   0xf   :  { %23 = vsyncpa [#allocation5], 0 }
  0x10   :  { %25 = vsyncpa [#allocation5 + $0x1], 0 }
  0x11   :  { %26 = vsyncpa [#allocation14], 0 }
  0x12   :  { %28 = vsyncpa [#allocation14 + $0x1], 0  ;;  %s2134_s13 = smov 0   ;;  %s2136_s14 = smov 0  }
  0x13   :  { %s2138_s15 = smov 0   ;;  %s2140_s16 = smov 0  }
  0x14   :  { %s2142_s17 = smov 0   ;;  %s2144_s18 = smov 0  }
  0x15   :  { %s2146_s19 = smov 0   ;;  %s2148_s20 = smov 0  }
  0x16   :  { %s2150_s21 = smov 0   ;;  %s2152_s22 = smov 0  }
  0x17   :  { %s2154_s23 = smov 0  }
  0x18 LB: > { %2729 = sst [smem:[#allocation20_spill]] %s2018_s14  ;;  %s2188_s24 = sadd.s32 4294967295, %s2054_s23   ;;  %s2054_s23 = sphi %s2154_s23, %s34_s23   ;;  %s2050_s22 = sphi %s2152_s22, %s2796_s22   ;;  %s2046_s21 = sphi %s2150_s21, %s2795_s21   ;;  %s2042_s20 = sphi %s2148_s20, %s2794_s20   ;;  %s2038_s19 = sphi %s2146_s19, %s2793_s19   ;;  %s2034_s18 = sphi %s2144_s18, %s2792_s18   ;;  %s2030_s17 = sphi %s2142_s17, %s2791_s17   ;;  %s2026_s16 = sphi %s2140_s16, %s2790_s16   ;;  %s2022_s15 = sphi %s2138_s15, %s2789_s15   ;;  %s2018_s14 = sphi %s2136_s14, %s2788_s14   ;;  %s2014_s13 = sphi %s2134_s13, %s2787_s13  }
  0x19   : > { %2730 = sst [smem:[#allocation21_spill]] %s2026_s16  ;;  %p94_p0 = scmp.ne.s32.totalorder %s2018_s14, %s2014_s13 }
  0x1a   : > { %2731 = sst [smem:[#allocation22_spill]] %s2038_s19  ;;  %p2693_p1 = scmp.eq.s32.totalorder %s2188_s24, 0 }
  0x1b   : > { %2732 = sst [smem:[#allocation23_spill]] %s2042_s20  ;;  %p1420_p2 = scmp.ge.s32.totalorder %s2054_s23, 1 }
  0x1c   : > { %2733 = sst [smem:[#allocation24_spill]] %s2188_s24  ;;  %p313_p3 = scmp.lt.s32.totalorder %s2054_s23, 5 }
  0x1d   : > { %p2196_p4 = por %p94_p0, %p2693_p1  ;;  %s2056_s27 = smov [#allocation9]  }
  0x1e   : > { %p2200_p5 = pnand %p1420_p2, %p313_p3  ;;  %s325_s28 = sshll.u32 %s2056_s27, 4  ;;  %s326_s28 = int_to_ptr.vmem [resolvable:$true] %s325_s28 }
  0x1f   : > { %s2734_s25 = scalar_select %p2196_p4, 1, 0 }
  0x20   : > { %s2736_s26 = scalar_select %p2200_p5, 1, 0 }
  0x21   : > { %2735 = sst [smem:[#allocation25_spill]] %s2734_s25  ;;  %p1587_p6 = pneg %p2200_p5 }
  0x22   : > { %s2738_s3 = sld [smem:[#allocation31_spill]] }
  0x23   : > { %p2208_p7 = pnand %p1587_p6, %p2693_p1 }
  0x25   : > { %p2704_p10 = pneg %p2208_p7 }
  0x28   : > { %s1746_s12 = scalar_lea.hbm %s2738_s3, 256 }
  0x29   : > { %p1747_p9 = scmp.ne.s32.totalorder %s2738_s3, %s1746_s12  ;;  %p1753_p13 = scmp.lt.u32.totalorder %s1746_s12, %s2738_s3 }
  0x2b   : > { %p1749_p11 = pnand %p2704_p10, %p1747_p9 }
  0x2d   : > { %p1750_p12 = pneg %p1749_p11 }
  0x2f   : > { %p1755_p0 = pnand %p1753_p13, %p1750_p12 }
  0x31   : > { %1758 = shalt.err (!%p1755_p0)
}
  0x32   : > { %s1759_s10 = scalar_lea.vmem %s326_s28, 256  ;;  %p1767_p1 = scmp.lt.s32.totalorder %s326_s28, %s326_s28 }
  0x33   : > { %p1760_p2 = scmp.ne.s32.totalorder %s326_s28, %s1759_s10  ;;  %p1768_p8 = scmp.lt.s32.totalorder %s1759_s10, %s1759_s10 }
  0x35   : > { %p1762_p3 = pnand %p1760_p2, %p2704_p10  ;;  %p1769_p4 = por %p1768_p8, %p1767_p1 }
  0x37   : > { %p1763_p6 = pneg %p1762_p3 }
  0x39   : > { %p1770_p5 = pnand %p1769_p4, %p1763_p6 }
  0x3b   : > { %1773 = shalt.err (!%p1770_p5)
}
  0x3c   : > { %s2697_s9 = smov 64   ;;  %s2699_s8 = smov 4  }
  0x3d   : > { %1590 = dma.hbm_to_vmem [thread:$0]  (!%p2208_p7), %s2738_s3, 256, %s326_s28, [#allocation10], %s2697_s9, %s2697_s9, %s2699_s8  }
  0x3e   : > { %p88_p1 = scmp.ne.s32.totalorder %s2022_s15, %s2018_s14  ;;  %p2703_p4 = scmp.lt.s32.totalorder %s2054_s23, 4 }
  0x3f   : > { %s384_s11 = sand.u32 1, %s2054_s23   ;;  %s386_s12 = sand.u32 1, %s2022_s15  }
  0x40   : > { %p2739_p5 = scmp.eq.s32.totalorder %s2054_s23, 0  ;;  %s2245_s13 = sshll.u32 %s386_s12, 3 }
  0x41   : > { %s1470_s27 = sshll.u32 %s2050_s22, 7  ;;  %s2740_s1 = sld [smem:[#allocation30_spill]] }
  0x42   : > { %p90_p8 = por %p88_p1, %p2739_p5  ;;  %s388_s28 = scalar_lea.vmem [#allocation6], %s2245_s13 }
  0x43   : > { %s395_s30 = sshll.u32 %s388_s28, 4  ;;  %s2265_s5 = scalar_lea.hbm %s2682_s2, %s1470_s27  ;;  %s2260_s30 = int_to_ptr.vmem [resolvable:$true] %s395_s30 }
  0x44   : > { %p2256_p9 = pnand %p2703_p4, %p90_p8  ;;  %s2267_s20 = scalar_lea.sflag [#allocation7], %s384_s11 }
  0x46   : > { %s2741_s10 = scalar_select %p2256_p9, 1, 0 }
  0x47   : > { %s2251_s6 = scalar_lea.hbm %s2740_s1, %s1470_s27  ;;  %p2705_p12 = pneg %p2256_p9 }
  0x48   : > { %s1774_s8 = scalar_lea.hbm %s2251_s6, 128  ;;  %s1779_s7 = scalar_lea.hbm %s2740_s1, 256 }
  0x49   : > { %p1775_p11 = scmp.ne.s32.totalorder %s2251_s6, %s1774_s8  ;;  %p1780_p2 = scmp.lt.u32.totalorder %s2251_s6, %s2740_s1 }
  0x4a   : > { %p1781_p3 = scmp.lt.u32.totalorder %s1779_s7, %s1774_s8  ;;  %p1783_p1 = scmp.lt.u32.totalorder %s1774_s8, %s2251_s6 }
  0x4b   : > { %p1777_p13 = pnand %p2705_p12, %p1775_p11 }
  0x4c   : > { %p1782_p6 = por %p1781_p3, %p1780_p2 }
  0x4d   : > { %p1778_p0 = pneg %p1777_p13 }
  0x4e   : > { %p1784_p5 = por %p1783_p1, %p1782_p6 }
  0x50   : > { %p1785_p8 = pnand %p1784_p5, %p1778_p0 }
  0x52   : > { %1788 = shalt.err (!%p1785_p8)
}
  0x53   : > { %s1789_s9 = scalar_lea.vmem %s2260_s30, 128  ;;  %s2059_s3 = smov [#allocation6]  }
  0x54   : > { %p1790_p11 = scmp.ne.s32.totalorder %s2260_s30, %s1789_s9  ;;  %s1794_s11 = sshll.u32 %s2059_s3, 4  ;;  %s1795_s11 = int_to_ptr.vmem [resolvable:$false] %s1794_s11 }
  0x55   : > { %s1796_s19 = scalar_lea.vmem %s1795_s11, 256  ;;  %p1797_p10 = scmp.lt.s32.totalorder %s2260_s30, %s1795_s11 }
  0x56   : > { %p1792_p13 = pnand %p1790_p11, %p2705_p12  ;;  %p1798_p2 = scmp.lt.s32.totalorder %s1796_s19, %s1789_s9 }
  0x58   : > { %p1793_p4 = pneg %p1792_p13  ;;  %p1799_p3 = por %p1798_p2, %p1797_p10 }
  0x5a   : > { %p1800_p6 = pnand %p1799_p3, %p1793_p4 }
  0x5c   : > { %1803 = shalt.err (!%p1800_p6)
}
  0x5d   : > { %s2742_s7 = smov 4   ;;  %s2743_s25 = smov 64  }
  0x5e   : > { %1600 = dma.hbm_to_vmem [thread:$0]  (!%p2256_p9), %s2251_s6, 128, %s2260_s30, %s2267_s20, %s2743_s25, %s2743_s25, %s2742_s7  }
  0x5f   : > { %s409_s8 = scalar_lea.vmem [#allocation8], %s2245_s13  ;;  %s2060_s12 = smov [#allocation11]  }
  0x60   : > { %s416_s27 = sshll.u32 %s409_s8, 4  ;;  %s338_s28 = sshll.u32 %s2060_s12, 4  ;;  %s2299_s27 = int_to_ptr.vmem [resolvable:$true] %s416_s27  ;;  %s339_s28 = int_to_ptr.vmem [resolvable:$true] %s338_s28 }
  0x61   : > { %s2744_s4 = sld [smem:[#allocation32_spill]]  ;;  %p2745_p4 = pneg %p2208_p7 }
  0x67   : > { %s1804_s11 = scalar_lea.hbm %s2744_s4, 256 }
  0x68   : > { %p1805_p10 = scmp.ne.s32.totalorder %s2744_s4, %s1804_s11  ;;  %p1811_p5 = scmp.lt.u32.totalorder %s1804_s11, %s2744_s4 }
  0x6a   : > { %p1807_p0 = pnand %p1805_p10, %p2745_p4 }
  0x6c   : > { %p1808_p1 = pneg %p1807_p0 }
  0x6e   : > { %p1813_p8 = pnand %p1811_p5, %p1808_p1 }
  0x70   : > { %1816 = shalt.err (!%p1813_p8)
}
  0x71   : > { %s1817_s30 = scalar_lea.vmem %s339_s28, 256  ;;  %p2746_p13 = pmov %p2745_p4 }
  0x72   : > { %p1818_p11 = scmp.ne.s32.totalorder %s339_s28, %s1817_s30  ;;  %p1825_p6 = scmp.lt.s32.totalorder %s339_s28, %s339_s28 }
  0x73   : > { %p1826_p12 = scmp.lt.s32.totalorder %s1817_s30, %s1817_s30 }
  0x74   : > { %p1820_p2 = pnand %p1818_p11, %p2746_p13 }
  0x75   : > { %p1827_p9 = por %p1826_p12, %p1825_p6 }
  0x76   : > { %p1821_p3 = pneg %p1820_p2 }
  0x78   : > { %p1828_p4 = pnand %p1827_p9, %p1821_p3 }
  0x7a   : > { %1831 = shalt.err (!%p1828_p4)
}
  0x7b   : > { %1593 = dma.hbm_to_vmem [thread:$0]  (!%p2208_p7), %s2744_s4, 256, %s339_s28, [#allocation10], %s2743_s25, %s2743_s25, %s2742_s7  }
  0x7c   : > { %s1419_s29 = sadd.s32 4294967294, %s2054_s23   ;;  %s43_s12 = sadd.s32 1, %s2046_s21 }
  0x7d   : > { %s46_s9 = sadd.s32 1, %s2050_s22  ;;  %p44_p9 = scmp.ge.s32.totalorder %s43_s12, 2 }
  0x7e   : > { %s55_s3 = sadd.s32 1, %s2034_s18  ;;  %p62_p12 = scmp.ne.s32.totalorder %s2034_s18, %s2030_s17 }
  0x7f   : > { %p68_p10 = scmp.ne.s32.totalorder %s2030_s17, %s2026_s16  ;;  %s2798_s12 = smov (%p44_p9, %s43_s12), 0 }
  0x80   : > { %2747 = sst [smem:[#allocation26_spill]] %s2798_s12  ;;  %s2800_s9 = smov (!%p44_p9, %s46_s9), %s2050_s22 }
  0x81   : > { %s51_s11 = ssub.s32 %s2046_s21, %s2798_s12  ;;  %p2748_p0 = scmp.eq.s32.totalorder %s2054_s23, 0 }
  0x82   : > { %p48_p1 = scmp.ge.s32.totalorder %s2800_s9, 2  ;;  %p2750_p5 = scmp.eq.s32.totalorder %s2188_s24, 0 }
  0x83   : > { %p2339_p7 = por %p2748_p0, %p62_p12  ;;  %s81_s6 = sadd.s32 1, %s2022_s15 }
  0x84   : > { %p2348_p8 = por %p2750_p5, %p68_p10  ;;  %p272_p11 = scmp.eq.s32.totalorder %s2188_s24, 3 }
  0x85   : > { %s2802_s9 = smov (%p48_p1, %s2800_s9), 0  ;;  %p278_p2 = scmp.eq.s32.totalorder %s1419_s29, 3 }
  0x86   : > { %s2751_s19 = scalar_select %p2348_p8, 1, 0 }
  0x87   : > { %2753 = sst [smem:[#allocation28_spill]] %s2802_s9  ;;  %p2356_p13 = por %p272_p11, %p62_p12 }
  0x88   : > { %2752 = sst [smem:[#allocation27_spill]] %s2751_s19  ;;  %s50_s30 = ssub.s32 %s2050_s22, %s2802_s9 }
  0x89   : > { %s2754_s13 = scalar_select %p2356_p13, 1, 0 }
  0x8a   : > { %s364_s1 = sand.u32 1, %s2034_s18   ;;  %s52_s8 = sor.u32 %s51_s11, %s50_s30 }
  0x8b   : > { %2755 = sst [smem:[#allocation29_spill]] %s2754_s13  ;;  %p79_p3 = scmp.eq.s32.totalorder %s50_s30, 0 }
  0x8c   : > { %p53_p6 = scmp.eq.s32.totalorder %s52_s8, 0  ;;  %p2366_p4 = por %p278_p2, %p68_p10 }
  0x8d   : > { %s2371_s12 = scalar_select %p79_p3, %s2022_s15, %s81_s6  }
  0x8e   : > { %s2756_s4 = scalar_select %p2366_p4, 1, 0 }
  0x8f   : > { %s2374_s13 = scalar_select %p53_p6, %s2034_s18, %s55_s3  }
  0x90   : > { %s1424_s29 = sshll.u32 %s364_s1, 2  ;;  %s1425_s9 = sshll.u32 %s2050_s22, 1 }
  0x91   : > { %s373_s14 = sadd.s32 %s2046_s21, %s1425_s9  ;;  %s368_s11 = scalar_lea.vmem [#allocation3], %s1424_s29 }
  0x92   : > { %s377_s24 = sshll.u32 %s368_s11, 4  ;;  %s1426_s30 = sshll.u32 %s373_s14, 6  ;;  %s2380_s24 = int_to_ptr.vmem [resolvable:$true] %s377_s24 }
  0x93   : > { %s2385_s19 = scalar_lea.hbm %s2680_s0, %s1426_s30  ;;  %p2757_p9 = scmp.lt.s32.totalorder %s2054_s23, 4 }
  0x94   : > { %s1832_s6 = scalar_lea.hbm %s2265_s5, 128  ;;  %p2759_p0 = scmp.ne.s32.totalorder %s2741_s10, 0 }
  0x95   : > { %p2391_p12 = pnand %p2757_p9, %p2339_p7  ;;  %p1833_p10 = scmp.ne.s32.totalorder %s2265_s5, %s1832_s6 }
  0x96   : > { %p2760_p1 = pneg %p2759_p0  ;;  %s1837_s29 = scalar_lea.hbm %s2682_s2, 256 }
  0x97   : > { %p1838_p2 = scmp.lt.u32.totalorder %s2265_s5, %s2682_s2  ;;  %p1839_p3 = scmp.lt.u32.totalorder %s1837_s29, %s1832_s6 }
  0x98   : > { %p1835_p5 = pnand %p1833_p10, %p2760_p1  ;;  %p1841_p7 = scmp.lt.u32.totalorder %s1832_s6, %s2265_s5 }
  0x99   : > { %p1840_p6 = por %p1839_p3, %p1838_p2 }
  0x9a   : > { %p1836_p11 = pneg %p1835_p5 }
  0x9b   : > { %p1842_p9 = por %p1841_p7, %p1840_p6 }
  0x9d   : > { %p1843_p4 = pnand %p1842_p9, %p1836_p11 }
  0x9f   : > { %1846 = shalt.err (!%p1843_p4)
}
  0xa0   : > { %s1847_s28 = scalar_lea.vmem %s2299_s27, 128  ;;  %s2061_s30 = smov [#allocation8]  }
  0xa1   : > { %p1848_p10 = scmp.ne.s32.totalorder %s2299_s27, %s1847_s28  ;;  %s1852_s8 = sshll.u32 %s2061_s30, 4  ;;  %s1853_s8 = int_to_ptr.vmem [resolvable:$false] %s1852_s8 }
  0xa2   : > { %s1854_s14 = scalar_lea.vmem %s1853_s8, 256  ;;  %p1855_p8 = scmp.lt.s32.totalorder %s2299_s27, %s1853_s8 }
  0xa3   : > { %p1850_p5 = pnand %p1848_p10, %p2760_p1  ;;  %p1856_p2 = scmp.lt.s32.totalorder %s1854_s14, %s1847_s28 }
  0xa5   : > { %p1851_p13 = pneg %p1850_p5  ;;  %p1857_p3 = por %p1856_p2, %p1855_p8 }
  0xa7   : > { %p1858_p6 = pnand %p1857_p3, %p1851_p13 }
  0xa9   : > { %1861 = shalt.err (!%p1858_p6)
}
  0xaa   : > { %1603 = dma.hbm_to_vmem [thread:$0]  (!%p2759_p0), %s2265_s5, 128, %s2299_s27, %s2267_s20, %s2743_s25, %s2743_s25, %s2742_s7  }
  0xab   : > { %s365_s6 = scalar_lea.sflag [#allocation4], %s364_s1  ;;  %s1862_s9 = scalar_lea.hbm %s2385_s19, 64 }
  0xac   : > { %p1863_p8 = scmp.ne.s32.totalorder %s2385_s19, %s1862_s9  ;;  %p1864_p13 = pneg %p2391_p12 }
  0xad   : > { %s1867_s11 = scalar_lea.hbm %s2680_s0, 256  ;;  %p1868_p7 = scmp.lt.u32.totalorder %s2385_s19, %s2680_s0 }
  0xae   : > { %p1865_p4 = pnand %p1864_p13, %p1863_p8  ;;  %p1869_p9 = scmp.lt.u32.totalorder %s1867_s11, %s1862_s9 }
  0xaf   : > { %p1871_p10 = scmp.lt.u32.totalorder %s1862_s9, %s2385_s19 }
  0xb0   : > { %p1866_p11 = pneg %p1865_p4  ;;  %p1870_p0 = por %p1869_p9, %p1868_p7 }
  0xb2   : > { %p1872_p1 = por %p1871_p10, %p1870_p0 }
  0xb4   : > { %p1873_p5 = pnand %p1872_p1, %p1866_p11 }
  0xb6   : > { %1876 = shalt.err (!%p1873_p5)
}
  0xb7   : > { %s1877_s5 = scalar_lea.vmem %s2380_s24, 64  ;;  %s2062_s20 = smov [#allocation3]  }
  0xb8   : > { %p1878_p2 = scmp.ne.s32.totalorder %s2380_s24, %s1877_s5  ;;  %s1882_s7 = sshll.u32 %s2062_s20, 4  ;;  %s1883_s7 = int_to_ptr.vmem [resolvable:$false] %s1882_s7 }
  0xb9   : > { %s1884_s25 = scalar_lea.vmem %s1883_s7, 128  ;;  %p1885_p8 = scmp.lt.s32.totalorder %s2380_s24, %s1883_s7 }
  0xba   : > { %p1880_p3 = pnand %p1878_p2, %p1864_p13  ;;  %p1886_p4 = scmp.lt.s32.totalorder %s1884_s25, %s1877_s5 }
  0xbc   : > { %p1881_p6 = pneg %p1880_p3  ;;  %p1887_p7 = por %p1886_p4, %p1885_p8 }
  0xbe   : > { %p1888_p9 = pnand %p1887_p7, %p1881_p6 }
  0xc0   : > { %1891 = shalt.err (!%p1888_p9)
}
  0xc1   : > { %1597 = dma.hbm_to_vmem [thread:$0]  (!%p2391_p12), %s2385_s19, 64, %s2380_s24, %s365_s6  }
  0xc2   : > { %p2761_p11 = scmp.ne.s32.totalorder %s2736_s26, 0 }
  0xc3   : > { %s2762_s27 = sld [smem:[#allocation27_spill]] (!%p2761_p11)  ;;  %s2452_s1 = sand.u32 (!%p2761_p11), 1, %s2030_s17  }
  0xc4   : > { %428 = sbr.rel (%p2761_p11) target bundleno = 1905 (0x771), region = 56  ;;  %s1434_s30 = sshll.u32 (!%p2761_p11), %s2452_s1, 2 }
  0xc5   : > { %s431_s8 = scalar_lea.sflag (!%p2761_p11), [#allocation4], %s2452_s1  ;;  %s2456_s14 = scalar_lea.vmem (!%p2761_p11), [#allocation3], %s1434_s30 }
  0xc9   : > { %p2763_p13 = scmp.ne.s32.totalorder (!%p2761_p11), %s2762_s27, 0 }
  0xcb   : > { %1993 = dma.done.wait (%p2763_p13), %s431_s8, 64  }
  0xcc   : > { %1995 = vsyncadd (%p2763_p13), %s431_s8, 4294967232  ;;  %s2764_s3 = sld [smem:[#allocation24_spill]]  ;;  %s2765_s24 = sld [smem:[#allocation20_spill]] }
  0xcd   : > { %s2766_s19 = sld [smem:[#allocation25_spill]] }
  0xd2   : > { %s439_s26 = sand.u32 1, %s2764_s3   ;;  %s441_s6 = sand.u32 1, %s2765_s24  }
  0xd3   : > { %s1435_s9 = sshll.u32 %s441_s6, 3  ;;  %s440_s10 = scalar_lea.sflag [#allocation7], %s439_s26 }
  0xd4   : > { %s443_s29 = scalar_lea.vmem [#allocation6], %s1435_s9  ;;  %p2767_p12 = scmp.ne.s32.totalorder %s2766_s19, 0 }
  0xd6   : > { %1997 = dma.done.wait (%p2767_p12), %s440_s10, 256  }
  0xd7   : > { %1999 = vsyncadd (%p2767_p12), %s440_s10, 4294967040  ;;  %p2768_p0 = scmp.eq.s32.totalorder %s2764_s3, 0 }
  0xd9   : > { %2001 = dma.done.wait (%p2768_p0), [#allocation10], 512   ;;  %p2769_p10 = pmov %p2768_p0 }
  0xda   : > { %s1438_s11 = sshll.u32 %s2452_s1, 3  ;;  %s2770_s5 = sld [smem:[#allocation22_spill]] }
  0xdb   : > { %2003 = vsyncadd (%p2769_p10), [#allocation10], 4294966784  ;;  %s2473_s16 = scalar_lea.vmem [#allocation12], %s1438_s11  ;;  %s2475_s28 = scalar_lea.vmem [#allocation13], %s1438_s11 }
  0xe0   : > { %p1440_p1 = scmp.ne.s32.totalorder %s2770_s5, 0 }
  0xe1   : > { %v1723_v0 = vld [vmem:[#allocation11] sm:$0xff] (!%p1440_p1)   ;;  %v2063_v1 = vmov (!%p1440_p1), 0.0   ;;  %v1724_v2 = vld [vmem:[#allocation11 + $0x8] sm:$0xff] (!%p1440_p1)   ;;  %vm2064_vm0 = vmmov (!%p1440_p1), 0   ;;  %v1725_v3 = vld [vmem:[%s443_s29] sm:$0xff] (!%p1440_p1)   ;;  %vm547_vm1 = vcmask (!%p1440_p1), 261120  }
  0xe2   : > { %516 = sbr.rel (%p1440_p1) target bundleno = 453 (0x1c5), region = 80  ;;  %1497 = vmatprep.subr.bf16.mxu0 (!%p1440_p1), %v2063_v1  ;;  %1501 = vmatprep.mubr.msk.bf16.mxu0 (!%p1440_p1), %vm2064_vm0, %v2063_v1  ;;  %s2771_s25 = sld [smem:[#allocation35_spill]] (!%p1440_p1)  ;;  %vm593_vm2 = vcmask (!%p1440_p1), 523264  }
  0xe3   : > { %1498 = vmatpush3.bf16.msra.mxu0 (!%p1440_p1), %v1723_v0 }
  0xe4   : > { %1499 = vmatprep.subr.bf16.mxu0 (!%p1440_p1), %v2063_v1 }
  0xe7   : > { %1500 = vmatpush3.bf16.msra.mxu0 (!%p1440_p1), %v1724_v2 }
  0xe8   : > { %v1441_v4 = vld [vmem:[%s2771_s25] ss:$0 sm:$0xff] (!%p1440_p1) }
  0xea   : > { %1502 = vmatmul.mubr.msk.bf16.vlgmr.msra.gmra.mrb[0].mxu0 %vm547_vm1, %v1725_v3 }
 0x1bd   : > { %v585_v5 = vpop.f32.mrb[0].mxu0 }
 0x1be   : > { %v1503_v6 = vpop.f32.mrb[1].mxu0  ;;  %v586_v8 = vadd.f32 %v1441_v4, %v585_v5 }
 0x1bf   : > { %v588_v7 = vpop.f32.mrb[2].mxu0 }
 0x1c0   : > { %v589_v9 = vadd.f32 %v1441_v4, %v588_v7  ;;  %v1504_v10 = vpop.f32.mrb[3].mxu0 }
 0x1c2   : > { %v592_v11 = vpack.c.bf16 %v589_v9, %v586_v8 }
 0x1c4   : > { %594 = vst.msk [vmem:[#allocation2] sm:$0xff] %vm593_vm2, %v592_v11 }
 0x1c5 PF: > { %v1726_v12 = vld [vmem:[#allocation9] sm:$0xff]   ;;  %v2065_v13 = vmov 0.0   ;;  %v1727_v14 = vld [vmem:[#allocation9 + $0x8] sm:$0xff]   ;;  %vm2066_vm3 = vmmov 0   ;;  %s2067_s27 = smov 120   ;;  %vm619_vm4 = vcmask 261120  }
 0x1c6   : > { %1505 = vmatprep.subr.bf16.mxu0 %v2065_v13  ;;  %1513 = vmatprep.subr.bf16.mxu1 %v2065_v13  ;;  %v595_v16 = vld [vmem:[%s2456_s14] sm:$0xf]  ;;  %vm668_vm5 = vcmask 64512   ;;  %s2068_s30 = smov 112   ;;  %s2772_s3 = sld [smem:[#allocation34_spill]]  ;;  %vm666_vm6 = vcmask 130048  }
 0x1c7   : > { %1506 = vmatpush3.bf16.msra.mxu0 %v1726_v12  ;;  %1509 = vmatprep.mubr.msk.bf16.mxu0 %vm2066_vm3, %v2065_v13  ;;  %s2069_s24 = smov 104   ;;  %667 = vst.msk [vmem:[%s2475_s28] sm:$0xff] %vm666_vm6, %v2065_v13  ;;  %s2070_s19 = smov 96   ;;  %vm1129_vm7 = vcmask 195584  }
 0x1c8   : > { %1507 = vmatprep.subr.bf16.mxu0 %v2065_v13  ;;  %1515 = vmatprep.mubr.msk.bf16.mxu1 %vm2066_vm3, %v2065_v13  ;;  %s2071_s26 = smov 80   ;;  %s2072_s6 = smov 72  }
 0x1c9   : > { %s2073_s9 = smov 88   ;;  %s2773_s11 = sld [smem:[#allocation33_spill]] }
 0x1ca   : > { %s2074_s7 = smov 8   ;;  %s2075_s25 = smov 16  }
 0x1cb   : > { %v2485_v15 = vld [vmem:[#allocation2] sm:$0xff]  ;;  %1508 = vmatpush3.bf16.msra.mxu0 %v1727_v14  ;;  %s2076_s8 = smov 24   ;;  %s2776_s14 = sld [smem:[#allocation29_spill]] }
 0x1cc   : > { %781 = vrot.lane.b32.xlu0 %v2485_v15, %s2067_s27  ;;  %1519 = vmatprep.subr.bf16.mxu0 %v2065_v13  ;;  %v673_v17 = vsel %vm668_vm5, %v2485_v15, 0  ;;  %v1446_v18 = vld [vmem:[%s2772_s3] ss:$0 sm:$0xff]  ;;  %s1237_s29 = sshll.u32 %s2475_s28, 4  ;;  %s1207_s5 = scalar_lea.sflag [#allocation14], %s2452_s1  ;;  %s1238_s29 = int_to_ptr.vmem [resolvable:$true] %s1237_s29 }
 0x1cd   : > { %1514 = vmatpush3.bf16.xpose.msra.mxu1 %v673_v17  ;;  %893 = vrot.lane.b32.xlu1 %v2485_v15, %s2068_s30  ;;  %s1892_s20 = scalar_lea.vmem %s1238_s29, 128 }
 0x1ce   : > { %1510 = vmatmul.mubr.msk.bf16.vlgmr.msra.gmra.mrb[0].mxu0 %vm619_vm4, %v595_v16  ;;  %1525 = vmatprep.subr.bf16.mxu1 %v2065_v13  ;;  %v726_v16 = vld [vmem:[%s2475_s28] sm:$0xff]  ;;  %p1893_p5 = scmp.ne.s32.totalorder %s1238_s29, %s1892_s20 }
 0x1cf   : > { %1521 = vmatprep.mubr.msk.bf16.mxu0 %vm2066_vm3, %v2065_v13 }
 0x1d1   : > { %p2778_p2 = scmp.ne.s32.totalorder %s2776_s14, 0 }
 0x1d3   : > { %p1894_p3 = pnand %p1893_p5, %p2778_p2 }
 0x1d5   : > { %p1895_p6 = pneg %p1894_p3 }
 0x23e   : > { %v782_v25 = vpop.permute.xlu0 %781 }
 0x23f   : > { %v787_v27 = vsel %vm668_vm5, %v782_v25, 0  ;;  %v894_v28 = vpop.permute.xlu1 %893 }
 0x240   : > { %v899_v29 = vsel %vm668_vm5, %v894_v28, 0 }
 0x2a1   : > { %v657_v19 = vpop.f32.mrb[0].mxu0 }
 0x2a2   : > { %v658_v20 = vadd.f32 %v1446_v18, %v657_v19  ;;  %v1511_v21 = vpop.f32.mrb[1].mxu0 }
 0x2a3   : > { %v660_v22 = vpop.f32.mrb[2].mxu0 }
 0x2a4   : > { %v663_v23 = vmul.f32 0.35355338, %v658_v20  ;;  %v1512_v24 = vpop.f32.mrb[3].mxu0 }
 0x2a6   : > { %v664_v26 = vpack.c.bf16 %v663_v23, %v663_v23 }
 0x2a8   : > { %891 = vrot.lane.b32.xlu1 %v664_v26, %s2068_s30  ;;  %779 = vrot.lane.b32.xlu0 %v664_v26, %s2067_s27  ;;  %s2774_s27 = sld [smem:[#allocation23_spill]]  ;;  %s2775_s30 = sld [smem:[#allocation22_spill]] }
 0x2a9   : > { %1516 = vmatmul.mubr.msk.bf16.vlgmr.msra.gmra.mrb[0].mxu1 %vm668_vm5, %v664_v26 }
 0x2aa   : > { %1526 = vmatpush3.bf16.xpose.msra.mxu1 %v787_v27  ;;  %1527 = vmatprep.mubr.msk.bf16.mxu1 %vm2066_vm3, %v2065_v13 }
 0x2ab   : > { %1537 = vmatprep.subr.bf16.mxu1 %v2065_v13 }
 0x2ac   : > { %1003 = vrot.lane.b32.xlu1 %v664_v26, %s2069_s24  ;;  %1005 = vrot.lane.b32.xlu0 %v2485_v15, %s2069_s24 }
 0x2ae   : > { %s1464_s3 = sshll.u32 %s2774_s27, 1 }
 0x2af   : > { %s2577_s24 = sadd.s32 %s2775_s30, %s1464_s3 }
 0x31a   : > { %v780_v30 = vpop.permute.xlu0 %779  ;;  %v892_v33 = vpop.permute.xlu1 %891 }
 0x31b   : > { %1528 = vmatmul.mubr.msk.bf16.vlgmr.msra.gmra.mrb[4].mxu1 %vm668_vm5, %v780_v30 }
 0x31c   : > { %1538 = vmatpush3.bf16.xpose.msra.mxu1 %v899_v29  ;;  %1539 = vmatprep.mubr.msk.bf16.mxu1 %vm2066_vm3, %v2065_v13 }
 0x31d   : > { %1549 = vmatprep.subr.bf16.mxu1 %v2065_v13 }
 0x31e   : > { %v1006_v31 = vpop.permute.xlu0 %1005  ;;  %v1004_v34 = vpop.permute.xlu1 %1003 }
 0x31f   : > { %v1011_v32 = vsel %vm668_vm5, %v1006_v31, 0 }
 0x323   : > { %1540 = vmatmul.mubr.msk.bf16.vlgmr.msra.gmra.mrb[8].mxu1 %vm668_vm5, %v892_v33 }
 0x324   : > { %1550 = vmatpush3.bf16.xpose.msra.mxu1 %v1011_v32  ;;  %1551 = vmatprep.mubr.msk.bf16.mxu1 %vm2066_vm3, %v2065_v13 }
 0x325   : > { %1561 = vmatprep.subr.bf16.mxu1 %v2065_v13 }
 0x32b   : > { %1552 = vmatmul.mubr.msk.bf16.vlgmr.msra.gmra.mrb[12].mxu1 %vm668_vm5, %v1004_v34 }
 0x32c   : > { %1565 = vmatprep.mubr.msk.bf16.mxu1 %vm2066_vm3, %v2065_v13 }
 0x37c   : > { %v709_v35 = vpop.f32.mrb[0].mxu1 }
 0x37d   : > { %v1517_v36 = vpop.f32.mrb[1].mxu1  ;;  %v715_v37 = vsel %vm666_vm6, %v709_v35, -inf }
 0x37e   : > { %716 = vmax.xlane.f32.xlu0 %v715_v37  ;;  %v712_v38 = vpop.f32.mrb[2].mxu1 }
 0x37f   : > { %v1518_v39 = vpop.f32.mrb[3].mxu1 }
 0x3ee   : > { %v823_v40 = vpop.f32.mrb[4].mxu1 }
 0x3ef   : > { %v1529_v41 = vpop.f32.mrb[5].mxu1  ;;  %v829_v42 = vsel %vm666_vm6, %v823_v40, -inf }
 0x3f0   : > { %830 = vmax.xlane.f32.xlu1 %v829_v42  ;;  %v826_v43 = vpop.f32.mrb[6].mxu1 }
 0x3f1   : > { %v1530_v44 = vpop.f32.mrb[7].mxu1 }
 0x3f6   : > { %v935_v45 = vpop.f32.mrb[8].mxu1 }
 0x3f7   : > { %v1541_v46 = vpop.f32.mrb[9].mxu1  ;;  %v941_v47 = vsel %vm666_vm6, %v935_v45, -inf }
 0x3f8   : > { %942 = vmax.xlane.f32.xlu0 %v941_v47  ;;  %v938_v48 = vpop.f32.mrb[10].mxu1  ;;  %v1728_v46 = vld [vmem:[%s2773_s11] sm:$0xff]  }
 0x3f9   : > { %v1542_v49 = vpop.f32.mrb[11].mxu1  ;;  %1562 = vmatpush3.bf16.msra.mxu1 %v1728_v46  ;;  %v1729_v48 = vld [vmem:[%s2773_s11 + $0x8] sm:$0xff]  }
 0x3fa   : > { %1563 = vmatprep.subr.bf16.mxu1 %v2065_v13 }
 0x3fd   : > { %1564 = vmatpush3.bf16.msra.mxu1 %v1729_v48 }
 0x3fe   : > { %v1047_v50 = vpop.f32.mrb[12].mxu1 }
 0x3ff   : > { %v1553_v51 = vpop.f32.mrb[13].mxu1  ;;  %v1053_v52 = vsel %vm666_vm6, %v1047_v50, -inf }
 0x400   : > { %1054 = vmax.xlane.f32.xlu0 %v1053_v52  ;;  %v1050_v53 = vpop.f32.mrb[14].mxu1 }
 0x401   : > { %v1554_v54 = vpop.f32.mrb[15].mxu1 }
 0x40b   : > { %v717_v55 = vpop.xlane.xlu0 %716 }
 0x40c   : > { %v718_v56 = vsub.f32 %v709_v35, %v717_v55 }
 0x40e   : > { %v719_v57 = vmul.f32 1.442695, %v718_v56 }
 0x410   : > { %1730 = vpow2.f32 %v719_v57 }
 0x41a   : > { %v1731_v58 = vpop.eup %1730 }
 0x41b   : > { %v721_v59 = vsel %vm666_vm6, %v1731_v58, 0.0 }
 0x41c   : > { %722 = vadd.xlane.f32.xlu1 %v721_v59 }
 0x42d   : > { %731 = vrot.lane.b32.xlu1 %v2485_v15, %s2070_s19  ;;  %s1465_s19 = sshll.u32 %s2577_s24, 7 }
 0x47d   : > { %v831_v60 = vpop.xlane.xlu1 %830 }
 0x47e   : > { %v832_v61 = vsub.f32 %v823_v40, %v831_v60 }
 0x480   : > { %v833_v62 = vmul.f32 1.442695, %v832_v61 }
 0x482   : > { %1732 = vpow2.f32 %v833_v62 }
 0x485   : > { %v943_v63 = vpop.xlane.xlu0 %942 }
 0x486   : > { %v944_v0 = vsub.f32 %v935_v45, %v943_v63 }
 0x488   : > { %v945_v1 = vmul.f32 1.442695, %v944_v0 }
 0x48a   : > { %1734 = vpow2.f32 %v945_v1 }
 0x48c   : > { %v1733_v2 = vpop.eup %1732 }
 0x48d   : > { %v1055_v3 = vpop.xlane.xlu0 %1054  ;;  %v835_v4 = vsel %vm666_vm6, %v1733_v2, 0.0 }
 0x48e   : > { %v1056_v5 = vsub.f32 %v1047_v50, %v1055_v3  ;;  %836 = vadd.xlane.f32.xlu0 %v835_v4 }
 0x490   : > { %v1057_v6 = vmul.f32 1.442695, %v1056_v5 }
 0x492   : > { %1736 = vpow2.f32 %v1057_v6 }
 0x494   : > { %v1735_v7 = vpop.eup %1734 }
 0x495   : > { %v947_v8 = vsel %vm666_vm6, %v1735_v7, 0.0 }
 0x496   : > { %948 = vadd.xlane.f32.xlu1 %v947_v8 }
 0x49c   : > { %v1737_v9 = vpop.eup %1736 }
 0x49d   : > { %v1059_v10 = vsel %vm666_vm6, %v1737_v9, 0.0 }
 0x49e   : > { %1060 = vadd.xlane.f32.xlu0 %v1059_v10 }
 0x4a7   : > { %956 = vrot.lane.b32.xlu1 %v2485_v15, %s2071_s26 }
 0x4a9   : > { %v723_v11 = vpop.xlane.xlu1 %722 }
 0x4aa   : > { %1738 = vrcp.f32 %v723_v11 }
 0x4ab   : > { %1068 = vrot.lane.b32.xlu1 %v2485_v15, %s2072_s6 }
 0x4ad   : > { %v732_v12 = vpop.permute.xlu1 %731 }
 0x4ae   : > { %1520 = vmatpush3.bf16.msra.mxu0 %v732_v12 }
 0x4af   : > { %1531 = vmatprep.subr.bf16.mxu0 %v2065_v13 }
 0x4b4   : > { %v1739_v14 = vpop.eup %1738  ;;  %844 = vrot.lane.b32.xlu0 %v2485_v15, %s2073_s9  ;;  %s2777_s9 = sld [smem:[#allocation38_spill]] }
 0x4b5   : > { %v725_v17 = vmul.f32 %v1739_v14, %v1731_v58 }
 0x4b7   : > { %v727_v18 = vadd.f32 %v726_v16, %v725_v17  ;;  %v729_v19 = vpack.c.bf16 %v725_v17, %v725_v17 }
 0x4b9   : > { %728 = vst.msk [vmem:[%s2475_s28] sm:$0xff] %vm666_vm6, %v727_v18  ;;  %1522 = vmatmul.mubr.msk.bf16.vlgmr.msra.gmra.mrb[4].mxu0 %vm666_vm6, %v729_v19 }
 0x4ba   : > { %1533 = vmatprep.mubr.msk.bf16.mxu0 %vm2066_vm3, %v2065_v13  ;;  %s2585_s10 = scalar_lea.hbm %s2777_s9, %s1465_s19 }
 0x4c0   : > { %v840_v24 = vld [vmem:[%s2475_s28] sm:$0xff] }
 0x51b   : > { %v837_v20 = vpop.xlane.xlu0 %836 }
 0x51c   : > { %1740 = vrcp.f32 %v837_v20 }
 0x523   : > { %v949_v21 = vpop.xlane.xlu1 %948 }
 0x524   : > { %1742 = vrcp.f32 %v949_v21 }
 0x526   : > { %v1741_v22 = vpop.eup %1740 }
 0x527   : > { %v839_v23 = vmul.f32 %v1741_v22, %v1733_v2  ;;  %v957_v30 = vpop.permute.xlu1 %956 }
 0x529   : > { %v841_v25 = vadd.f32 %v840_v24, %v839_v23  ;;  %v843_v29 = vpack.c.bf16 %v839_v23, %v839_v23 }
 0x52b   : > { %842 = vst.msk [vmem:[%s2475_s28] sm:$0xff] %vm666_vm6, %v841_v25  ;;  %v1061_v15 = vpop.xlane.xlu0 %1060  ;;  %v1069_v35 = vpop.permute.xlu1 %1068 }
 0x52c   : > { %1744 = vrcp.f32 %v1061_v15 }
 0x52e   : > { %v1743_v26 = vpop.eup %1742 }
 0x52f   : > { %v845_v27 = vpop.permute.xlu0 %844  ;;  %v951_v28 = vmul.f32 %v1743_v26, %v1735_v7 }
 0x530   : > { %1532 = vmatpush3.bf16.msra.mxu0 %v845_v27 }
 0x531   : > { %1543 = vmatprep.subr.bf16.mxu0 %v2065_v13  ;;  %v955_v34 = vpack.c.bf16 %v951_v28, %v951_v28 }
 0x532   : > { %v952_v31 = vld [vmem:[%s2475_s28] sm:$0xff] }
 0x533   : > { %v953_v32 = vadd.f32 %v952_v31, %v951_v28  ;;  %1534 = vmatmul.mubr.msk.bf16.vlgmr.msra.gmra.mrb[8].mxu0 %vm666_vm6, %v843_v29 }
 0x534   : > { %1544 = vmatpush3.bf16.msra.mxu0 %v957_v30  ;;  %1545 = vmatprep.mubr.msk.bf16.mxu0 %vm2066_vm3, %v2065_v13 }
 0x535   : > { %954 = vst.msk [vmem:[%s2475_s28] sm:$0xff] %vm666_vm6, %v953_v32  ;;  %1555 = vmatprep.subr.bf16.mxu0 %v2065_v13 }
 0x536   : > { %v1745_v33 = vpop.eup %1744 }
 0x537   : > { %v1063_v36 = vmul.f32 %v1745_v33, %v1737_v9 }
 0x539   : > { %v1067_v39 = vpack.c.bf16 %v1063_v36, %v1063_v36 }
 0x53b   : > { %1546 = vmatmul.mubr.msk.bf16.vlgmr.msra.gmra.mrb[12].mxu0 %vm666_vm6, %v955_v34 }
 0x53c   : > { %1556 = vmatpush3.bf16.msra.mxu0 %v1069_v35  ;;  %1557 = vmatprep.mubr.msk.bf16.mxu0 %vm2066_vm3, %v2065_v13  ;;  %v1064_v37 = vld [vmem:[%s2475_s28] sm:$0xff] }
 0x53d   : > { %v1065_v38 = vadd.f32 %v1064_v37, %v1063_v36 }
 0x53f   : > { %1066 = vst.msk [vmem:[%s2475_s28] sm:$0xff] %vm666_vm6, %v1065_v38 }
 0x543   : > { %1558 = vmatmul.mubr.msk.bf16.vlgmr.msra.gmra.mrb[16].mxu0 %vm666_vm6, %v1067_v39 }
 0x546   : > { %v1198_v40 = vld [vmem:[%s2475_s28] sm:$0xff] }
 0x547   : > { %v1199_v41 = vmul.f32 0.25, %v1198_v40 }
 0x549   : > { %1200 = vst.msk [vmem:[%s2475_s28] sm:$0xff] %vm666_vm6, %v1199_v41 }
 0x58c   : > { %v771_v42 = vpop.f32.mrb[4].mxu0 }
 0x58d   : > { %v1523_v43 = vpop.f32.mrb[5].mxu0  ;;  %v777_v63 = vpack.c.bf16 %v771_v42, %v771_v42 }
 0x58e   : > { %v774_v44 = vpop.f32.mrb[6].mxu0 }
 0x58f   : > { %v1524_v45 = vpop.f32.mrb[7].mxu0 }
 0x606   : > { %v884_v47 = vpop.f32.mrb[8].mxu0 }
 0x607   : > { %v890_v49 = vpack.c.bf16 %v884_v47, %v884_v47  ;;  %v1535_v50 = vpop.f32.mrb[9].mxu0 }
 0x608   : > { %v887_v51 = vpop.f32.mrb[10].mxu0 }
 0x609   : > { %1116 = vrot.lane.b32.xlu0 %v890_v49, %s2074_s7  ;;  %v1536_v52 = vpop.f32.mrb[11].mxu0  ;;  %s2077_s7 = smov [#allocation13]  }
 0x60e   : > { %v996_v53 = vpop.f32.mrb[12].mxu0 }
 0x60f   : > { %v1002_v54 = vpack.c.bf16 %v996_v53, %v996_v53  ;;  %v1547_v55 = vpop.f32.mrb[13].mxu0 }
 0x610   : > { %v999_v56 = vpop.f32.mrb[14].mxu0 }
 0x611   : > { %1119 = vrot.lane.b32.xlu1 %v1002_v54, %s2075_s25  ;;  %v1548_v57 = vpop.f32.mrb[15].mxu0  ;;  %s1896_s25 = sshll.u32 %s2077_s7, 4  ;;  %s1897_s25 = int_to_ptr.vmem [resolvable:$false] %s1896_s25 }
 0x612   : > { %s1898_s27 = scalar_lea.vmem %s1897_s25, 256  ;;  %p1899_p8 = scmp.lt.s32.totalorder %s1238_s29, %s1897_s25 }
 0x613   : > { %p1900_p4 = scmp.lt.s32.totalorder %s1898_s27, %s1892_s20 }
 0x615   : > { %p1901_p7 = por %p1900_p4, %p1899_p8 }
 0x616   : > { %v1108_v58 = vpop.f32.mrb[16].mxu0 }
 0x617   : > { %v1114_v59 = vpack.c.bf16 %v1108_v58, %v1108_v58  ;;  %v1559_v60 = vpop.f32.mrb[17].mxu0  ;;  %p1902_p9 = pnand %p1901_p7, %p1895_p6 }
 0x618   : > { %v1111_v61 = vpop.f32.mrb[18].mxu0 }
 0x619   : > { %1122 = vrot.lane.b32.xlu0 %v1114_v59, %s2076_s8  ;;  %v1560_v13 = vpop.f32.mrb[19].mxu0 }
 0x67b   : > { %v1117_v62 = vpop.permute.xlu0 %1116 }
 0x67c   : > { %v1126_v1 = vsel %vm668_vm5, %v777_v63, %v1117_v62 }
 0x683   : > { %v1120_v0 = vpop.permute.xlu1 %1119 }
 0x684   : > { %v1128_v2 = vsel %vm666_vm6, %v1126_v1, %v1120_v0 }
 0x68b   : > { %v1123_v3 = vpop.permute.xlu0 %1122 }
 0x68c   : > { %v1131_v4 = vsel %vm1129_vm7, %v1128_v2, %v1123_v3 }
 0x68d   : > { %1566 = vmatmul.mubr.msk.bf16.vlgmr.msra.gmra.mrb[16].mxu1 %vm619_vm4, %v1131_v4 }
 0x68e   : > { %1905 = shalt.err (!%p1902_p9)
}
 0x68f   : > { %s1906_s28 = scalar_lea.hbm %s2585_s10, 128  ;;  %s1910_s3 = scalar_lea.hbm %s2777_s9, 512 }
 0x690   : > { %p1907_p11 = scmp.ne.s32.totalorder %s2585_s10, %s1906_s28  ;;  %p1911_p0 = scmp.lt.u32.totalorder %s2585_s10, %s2777_s9 }
 0x691   : > { %p1912_p10 = scmp.lt.u32.totalorder %s1910_s3, %s1906_s28  ;;  %p1914_p5 = scmp.lt.u32.totalorder %s1906_s28, %s2585_s10 }
 0x692   : > { %p1908_p13 = pnand %p1907_p11, %p2778_p2 }
 0x693   : > { %p1913_p1 = por %p1912_p10, %p1911_p0 }
 0x694   : > { %p1909_p12 = pneg %p1908_p13 }
 0x695   : > { %p1915_p3 = por %p1914_p5, %p1913_p1 }
 0x697   : > { %p1916_p6 = pnand %p1915_p3, %p1909_p12 }
 0x699   : > { %1919 = shalt.err (!%p1916_p6)
}
 0x69a   : > { %1584 = dma.vmem_to_hbm [thread:$0]  (%p2778_p2), %s1238_s29, 128, %s2585_s10, %s1207_s5  }
 0x69b   : > { %s2779_s25 = sld [smem:[#allocation36_spill]]  ;;  %s1222_s27 = sshll.u32 %s2473_s16, 4  ;;  %s2617_s27 = int_to_ptr.vmem [resolvable:$true] %s1222_s27 }
 0x69c   : > { %s2780_s8 = sld [smem:[#allocation37_spill]]  ;;  %s1202_s10 = scalar_lea.sflag [#allocation5], %s2452_s1 }
 0x69d   : > { %s1920_s29 = scalar_lea.vmem %s2617_s27, 128  ;;  %s2078_s24 = smov [#allocation12]  }
 0x69e   : > { %p1921_p8 = scmp.ne.s32.totalorder %s2617_s27, %s1920_s29  ;;  %s1924_s5 = sshll.u32 %s2078_s24, 4  ;;  %s1925_s5 = int_to_ptr.vmem [resolvable:$false] %s1924_s5 }
 0x69f   : > { %p1927_p9 = scmp.lt.s32.totalorder %s2617_s27, %s1925_s5 }
 0x6a0   : > { %p1922_p4 = pnand %p1921_p8, %p2778_p2 }
 0x6a1   : > { %v1458_v5 = vld [vmem:[%s2779_s25] ss:$0 sm:$0xff] }
 0x6a2   : > { %s2615_s3 = scalar_lea.hbm %s2780_s8, %s1465_s19  ;;  %p1923_p7 = pneg %p1922_p4 }
 0x6a3   : > { %s1926_s19 = scalar_lea.vmem %s1925_s5, 256 }
 0x6a4   : > { %p1928_p11 = scmp.lt.s32.totalorder %s1926_s19, %s1920_s29 }
 0x6a6   : > { %p1929_p13 = por %p1928_p11, %p1927_p9 }
 0x6a8   : > { %p1930_p12 = pnand %p1929_p13, %p1923_p7 }
 0x760   : > { %v1191_v6 = vpop.f32.mrb[16].mxu1 }
 0x761   : > { %v1192_v7 = vadd.f32 %v1458_v5, %v1191_v6  ;;  %v1567_v8 = vpop.f32.mrb[17].mxu1 }
 0x762   : > { %v1194_v9 = vpop.f32.mrb[18].mxu1 }
 0x763   : > { %1197 = vst.msk [vmem:[%s2473_s16] sm:$0xff] %vm619_vm4, %v1192_v7  ;;  %v1568_v10 = vpop.f32.mrb[19].mxu1 }
 0x764   : > { %1933 = shalt.err (!%p1930_p12)
}
 0x765   : > { %s1934_s1 = scalar_lea.hbm %s2615_s3, 128  ;;  %s1938_s6 = scalar_lea.hbm %s2780_s8, 512 }
 0x766   : > { %p1935_p0 = scmp.ne.s32.totalorder %s2615_s3, %s1934_s1  ;;  %p1939_p5 = scmp.lt.u32.totalorder %s2615_s3, %s2780_s8 }
 0x767   : > { %p1940_p3 = scmp.lt.u32.totalorder %s1938_s6, %s1934_s1  ;;  %p1942_p8 = scmp.lt.u32.totalorder %s1934_s1, %s2615_s3 }
 0x768   : > { %p1936_p10 = pnand %p1935_p0, %p2778_p2 }
 0x769   : > { %p1941_p6 = por %p1940_p3, %p1939_p5 }
 0x76a   : > { %p1937_p1 = pneg %p1936_p10 }
 0x76b   : > { %p1943_p4 = por %p1942_p8, %p1941_p6 }
 0x76d   : > { %p1944_p7 = pnand %p1943_p4, %p1937_p1 }
 0x76f   : > { %1947 = shalt.err (!%p1944_p7)
}
 0x770   : > { %1583 = dma.vmem_to_hbm [thread:$0]  (%p2778_p2), %s2617_s27, 128, %s2615_s3, %s1202_s10  }
 0x771 PF: > { %s2781_s25 = sld [smem:[#allocation21_spill]]  ;;  %p1616_p9 = scmp.ge.s32.totalorder %s2054_s23, 2 }
 0x772   : > { %p2782_p11 = scmp.ne.s32.totalorder %s2756_s4, 0 }
 0x774   : > { %p1605_p13 = pnand %p1616_p9, %p2782_p11 }
 0x777   : > { %s1249_s28 = sand.u32 1, %s2781_s25  }
 0x778   : > { %s1250_s30 = scalar_lea.sflag [#allocation5], %s1249_s28 }
 0x779   : > { %2005 = dma.done.wait (!%p1605_p13), %s1250_s30, 128  }
 0x77a   : > { %2007 = vsyncadd (!%p1605_p13), %s1250_s30, 4294967168  ;;  %s1259_s29 = scalar_lea.sflag [#allocation14], %s1249_s28 }
 0x77b   : > { %2009 = dma.done.wait (!%p1605_p13), %s1259_s29, 128  }
 0x77c   : > { %2011 = vsyncadd (!%p1605_p13), %s1259_s29, 4294967168  ;;  %s34_s23 = sadd.s32 1, %s2054_s23   ;;  %s2783_s14 = sld [smem:[#allocation20_spill]] }
 0x77d   : > { %p31_p12 = scmp.ge.s32.totalorder %s34_s23, 6   ;;  %s2784_s27 = smov %s2374_s13 }
 0x77e   : > { %s2785_s3 = sld [smem:[#allocation26_spill]]  ;;  %s2786_s4 = sld [smem:[#allocation28_spill]] }
 0x77f   : > { %s2790_s16 = smov %s2030_s17  ;;  %s2791_s17 = smov %s2034_s18 }
 0x780   : > { %s2792_s18 = smov %s2784_s27  ;;  %s2793_s19 = smov %s2046_s21 }
 0x781   : > { %s2794_s20 = smov %s2050_s22  ;;  %33 = sbr.rel (!%p31_p12) target bundleno = 24 (0x18), region = 154 }
 0x782   : > { %s2787_s13 = smov %s2783_s14  ;;  %s2788_s14 = smov %s2022_s15 }
 0x783   : > { %s2789_s15 = smov %s2371_s12 }
 0x784   : > { %s2795_s21 = smov %s2785_s3  ;;  %s2796_s22 = smov %s2786_s4 }
 0x788   :  { %1264 = vsyncpa [#allocation4], 1 }
 0x789   :  { %1266 = vsyncpa [#allocation4 + $0x1], 1 }
 0x78a   :  { %1267 = vsyncpa [#allocation7], 1 }
 0x78b   :  { %1269 = vsyncpa [#allocation7 + $0x1], 1 }
 0x78c   :  { %1270 = vsyncpa [#allocation10], 1 }
 0x78d   :  { %1271 = vsyncpa [#allocation5], 1 }
 0x78e   :  { %1273 = vsyncpa [#allocation5 + $0x1], 1 }
 0x78f   :  { %1274 = vsyncpa [#allocation14], 1 }
 0x790   :  { %1276 = vsyncpa [#allocation14 + $0x1], 1 }

// kernel: tpu_custom_call.1
= control target key start
LH: loop header
LB: loop body
LE: loop exit
PB: predicated region body
PF: predicated region fallthrough
CT: control target
= control target key end

     0   :  { %s2680_s0 = inlined_call_operand.hbm [shape: bf16[2,16,32], index: 0, kind: input, shape index: {}]   ;;  %s2681_s1 = inlined_call_operand.hbm [shape: bf16[2,16,32], index: 1, kind: input, shape index: {}]   ;;  %s2682_s2 = inlined_call_operand.hbm [shape: bf16[2,16,32], index: 2, kind: input, shape index: {}]   ;;  %s2683_s3 = inlined_call_operand.hbm [shape: bf16[32,32], index: 3, kind: input, shape index: {}]   ;;  %s2684_s4 = inlined_call_operand.hbm [shape: bf16[32,64], index: 4, kind: input, shape index: {}]   ;;  %s2685_s5 = inlined_call_operand.vmem [shape: bf16[32,32], index: 5, kind: input, shape index: {}]   ;;  %s2686_s6 = inlined_call_operand.vmem [shape: f32[1,32], index: 6, kind: input, shape index: {}]   ;;  %s2687_s7 = inlined_call_operand.vmem [shape: f32[1,64], index: 7, kind: input, shape index: {}]   ;;  %s2688_s8 = inlined_call_operand.vmem [shape: f32[1,32], index: 8, kind: input, shape index: {}]   ;;  %s2689_s9 = inlined_call_operand.hbm [shape: f32[2,16,32], index: 9, kind: output, shape index: {0}]   ;;  %s2690_s10 = inlined_call_operand.hbm [shape: f32[2,16,16], index: 10, kind: output, shape index: {1}]  }
   0x1   :  { %2720 = sst [smem:[#allocation30_spill]] %s2681_s1 }
   0x2   :  { %2721 = sst [smem:[#allocation31_spill]] %s2683_s3 }
   0x3   :  { %2722 = sst [smem:[#allocation32_spill]] %s2684_s4 }
   0x4   :  { %2723 = sst [smem:[#allocation33_spill]] %s2685_s5 }
   0x5   :  { %2724 = sst [smem:[#allocation34_spill]] %s2686_s6 }
   0x6   :  { %2725 = sst [smem:[#allocation35_spill]] %s2687_s7 }
   0x7   :  { %2726 = sst [smem:[#allocation36_spill]] %s2688_s8 }
   0x8   :  { %2727 = sst [smem:[#allocation37_spill]] %s2689_s9 }
   0x9   :  { %2728 = sst [smem:[#allocation38_spill]] %s2690_s10 }
   0xa   :  { %16 = vsyncpa [#allocation4], 0 }
   0xb   :  { %18 = vsyncpa [#allocation4 + $0x1], 0 }
   0xc   :  { %19 = vsyncpa [#allocation7], 0 }
   0xd   :  { %21 = vsyncpa [#allocation7 + $0x1], 0 }
   0xe   :  { %22 = vsyncpa [#allocation10], 0 }
   0xf   :  { %23 = vsyncpa [#allocation5], 0 }
  0x10   :  { %25 = vsyncpa [#allocation5 + $0x1], 0 }
  0x11   :  { %26 = vsyncpa [#allocation14], 0 }
  0x12   :  { %28 = vsyncpa [#allocation14 + $0x1], 0  ;;  %s2134_s13 = smov 0   ;;  %s2136_s14 = smov 0  }
  0x13   :  { %s2138_s15 = smov 0   ;;  %s2140_s16 = smov 0  }
  0x14   :  { %s2142_s17 = smov 0   ;;  %s2144_s18 = smov 0  }
  0x15   :  { %s2146_s19 = smov 0   ;;  %s2148_s20 = smov 0  }
  0x16   :  { %s2150_s21 = smov 0   ;;  %s2152_s22 = smov 0  }
  0x17   :  { %s2154_s23 = smov 0  }
  0x18 LB: > { %2729 = sst [smem:[#allocation20_spill]] %s2018_s14  ;;  %s2188_s24 = sadd.s32 4294967295, %s2054_s23   ;;  %s2054_s23 = sphi %s2154_s23, %s34_s23   ;;  %s2050_s22 = sphi %s2152_s22, %s2796_s22   ;;  %s2046_s21 = sphi %s2150_s21, %s2795_s21   ;;  %s2042_s20 = sphi %s2148_s20, %s2794_s20   ;;  %s2038_s19 = sphi %s2146_s19, %s2793_s19   ;;  %s2034_s18 = sphi %s2144_s18, %s2792_s18   ;;  %s2030_s17 = sphi %s2142_s17, %s2791_s17   ;;  %s2026_s16 = sphi %s2140_s16, %s2790_s16   ;;  %s2022_s15 = sphi %s2138_s15, %s2789_s15   ;;  %s2018_s14 = sphi %s2136_s14, %s2788_s14   ;;  %s2014_s13 = sphi %s2134_s13, %s2787_s13  }
  0x19   : > { %2730 = sst [smem:[#allocation21_spill]] %s2026_s16  ;;  %p94_p0 = scmp.ne.s32.totalorder %s2018_s14, %s2014_s13 }
  0x1a   : > { %2731 = sst [smem:[#allocation22_spill]] %s2038_s19  ;;  %p2693_p1 = scmp.eq.s32.totalorder %s2188_s24, 0 }
  0x1b   : > { %2732 = sst [smem:[#allocation23_spill]] %s2042_s20  ;;  %p1420_p2 = scmp.ge.s32.totalorder %s2054_s23, 1 }
  0x1c   : > { %2733 = sst [smem:[#allocation24_spill]] %s2188_s24  ;;  %p313_p3 = scmp.lt.s32.totalorder %s2054_s23, 5 }
  0x1d   : > { %p2196_p4 = por %p94_p0, %p2693_p1  ;;  %s2056_s27 = smov [#allocation9]  }
  0x1e   : > { %p2200_p5 = pnand %p1420_p2, %p313_p3  ;;  %s325_s28 = sshll.u32 %s2056_s27, 4  ;;  %s326_s28 = int_to_ptr.vmem [resolvable:$true] %s325_s28 }
  0x1f   : > { %s2734_s25 = scalar_select %p2196_p4, 1, 0 }
  0x20   : > { %s2736_s26 = scalar_select %p2200_p5, 1, 0 }
  0x21   : > { %2735 = sst [smem:[#allocation25_spill]] %s2734_s25  ;;  %p1587_p6 = pneg %p2200_p5 }
  0x22   : > { %s2738_s3 = sld [smem:[#allocation31_spill]] }
  0x23   : > { %p2208_p7 = pnand %p1587_p6, %p2693_p1 }
  0x25   : > { %p2704_p10 = pneg %p2208_p7 }
  0x28   : > { %s1746_s12 = scalar_lea.hbm %s2738_s3, 256 }
  0x29   : > { %p1747_p9 = scmp.ne.s32.totalorder %s2738_s3, %s1746_s12  ;;  %p1753_p13 = scmp.lt.u32.totalorder %s1746_s12, %s2738_s3 }
  0x2b   : > { %p1749_p11 = pnand %p2704_p10, %p1747_p9 }
  0x2d   : > { %p1750_p12 = pneg %p1749_p11 }
  0x2f   : > { %p1755_p0 = pnand %p1753_p13, %p1750_p12 }
  0x31   : > { %1758 = shalt.err (!%p1755_p0)
}
  0x32   : > { %s1759_s10 = scalar_lea.vmem %s326_s28, 256  ;;  %p1767_p1 = scmp.lt.s32.totalorder %s326_s28, %s326_s28 }
  0x33   : > { %p1760_p2 = scmp.ne.s32.totalorder %s326_s28, %s1759_s10  ;;  %p1768_p8 = scmp.lt.s32.totalorder %s1759_s10, %s1759_s10 }
  0x35   : > { %p1762_p3 = pnand %p1760_p2, %p2704_p10  ;;  %p1769_p4 = por %p1768_p8, %p1767_p1 }
  0x37   : > { %p1763_p6 = pneg %p1762_p3 }
  0x39   : > { %p1770_p5 = pnand %p1769_p4, %p1763_p6 }
  0x3b   : > { %1773 = shalt.err (!%p1770_p5)
}
  0x3c   : > { %s2697_s9 = smov 64   ;;  %s2699_s8 = smov 4  }
  0x3d   : > { %1590 = dma.hbm_to_vmem [thread:$0]  (!%p2208_p7), %s2738_s3, 256, %s326_s28, [#allocation10], %s2697_s9, %s2697_s9, %s2699_s8  }
  0x3e   : > { %p88_p1 = scmp.ne.s32.totalorder %s2022_s15, %s2018_s14  ;;  %p2703_p4 = scmp.lt.s32.totalorder %s2054_s23, 4 }
  0x3f   : > { %s384_s11 = sand.u32 1, %s2054_s23   ;;  %s386_s12 = sand.u32 1, %s2022_s15  }
  0x40   : > { %p2739_p5 = scmp.eq.s32.totalorder %s2054_s23, 0  ;;  %s2245_s13 = sshll.u32 %s386_s12, 3 }
  0x41   : > { %s1470_s27 = sshll.u32 %s2050_s22, 7  ;;  %s2740_s1 = sld [smem:[#allocation30_spill]] }
  0x42   : > { %p90_p8 = por %p88_p1, %p2739_p5  ;;  %s388_s28 = scalar_lea.vmem [#allocation6], %s2245_s13 }
  0x43   : > { %s395_s30 = sshll.u32 %s388_s28, 4  ;;  %s2265_s5 = scalar_lea.hbm %s2682_s2, %s1470_s27  ;;  %s2260_s30 = int_to_ptr.vmem [resolvable:$true] %s395_s30 }
  0x44   : > { %p2256_p9 = pnand %p2703_p4, %p90_p8  ;;  %s2267_s20 = scalar_lea.sflag [#allocation7], %s384_s11 }
  0x46   : > { %s2741_s10 = scalar_select %p2256_p9, 1, 0 }
  0x47   : > { %s2251_s6 = scalar_lea.hbm %s2740_s1, %s1470_s27  ;;  %p2705_p12 = pneg %p2256_p9 }
  0x48   : > { %s1774_s8 = scalar_lea.hbm %s2251_s6, 128  ;;  %s1779_s7 = scalar_lea.hbm %s2740_s1, 256 }
  0x49   : > { %p1775_p11 = scmp.ne.s32.totalorder %s2251_s6, %s1774_s8  ;;  %p1780_p2 = scmp.lt.u32.totalorder %s2251_s6, %s2740_s1 }
  0x4a   : > { %p1781_p3 = scmp.lt.u32.totalorder %s1779_s7, %s1774_s8  ;;  %p1783_p1 = scmp.lt.u32.totalorder %s1774_s8, %s2251_s6 }
  0x4b   : > { %p1777_p13 = pnand %p2705_p12, %p1775_p11 }
  0x4c   : > { %p1782_p6 = por %p1781_p3, %p1780_p2 }
  0x4d   : > { %p1778_p0 = pneg %p1777_p13 }
  0x4e   : > { %p1784_p5 = por %p1783_p1, %p1782_p6 }
  0x50   : > { %p1785_p8 = pnand %p1784_p5, %p1778_p0 }
  0x52   : > { %1788 = shalt.err (!%p1785_p8)
}
  0x53   : > { %s1789_s9 = scalar_lea.vmem %s2260_s30, 128  ;;  %s2059_s3 = smov [#allocation6]  }
  0x54   : > { %p1790_p11 = scmp.ne.s32.totalorder %s2260_s30, %s1789_s9  ;;  %s1794_s11 = sshll.u32 %s2059_s3, 4  ;;  %s1795_s11 = int_to_ptr.vmem [resolvable:$false] %s1794_s11 }
  0x55   : > { %s1796_s19 = scalar_lea.vmem %s1795_s11, 256  ;;  %p1797_p10 = scmp.lt.s32.totalorder %s2260_s30, %s1795_s11 }
  0x56   : > { %p1792_p13 = pnand %p1790_p11, %p2705_p12  ;;  %p1798_p2 = scmp.lt.s32.totalorder %s1796_s19, %s1789_s9 }
  0x58   : > { %p1793_p4 = pneg %p1792_p13  ;;  %p1799_p3 = por %p1798_p2, %p1797_p10 }
  0x5a   : > { %p1800_p6 = pnand %p1799_p3, %p1793_p4 }
  0x5c   : > { %1803 = shalt.err (!%p1800_p6)
}
  0x5d   : > { %s2742_s7 = smov 4   ;;  %s2743_s25 = smov 64  }
  0x5e   : > { %1600 = dma.hbm_to_vmem [thread:$0]  (!%p2256_p9), %s2251_s6, 128, %s2260_s30, %s2267_s20, %s2743_s25, %s2743_s25, %s2742_s7  }
  0x5f   : > { %s409_s8 = scalar_lea.vmem [#allocation8], %s2245_s13  ;;  %s2060_s12 = smov [#allocation11]  }
  0x60   : > { %s416_s27 = sshll.u32 %s409_s8, 4  ;;  %s338_s28 = sshll.u32 %s2060_s12, 4  ;;  %s2299_s27 = int_to_ptr.vmem [resolvable:$true] %s416_s27  ;;  %s339_s28 = int_to_ptr.vmem [resolvable:$true] %s338_s28 }
  0x61   : > { %s2744_s4 = sld [smem:[#allocation32_spill]]  ;;  %p2745_p4 = pneg %p2208_p7 }
  0x67   : > { %s1804_s11 = scalar_lea.hbm %s2744_s4, 256 }
  0x68   : > { %p1805_p10 = scmp.ne.s32.totalorder %s2744_s4, %s1804_s11  ;;  %p1811_p5 = scmp.lt.u32.totalorder %s1804_s11, %s2744_s4 }
  0x6a   : > { %p1807_p0 = pnand %p1805_p10, %p2745_p4 }
  0x6c   : > { %p1808_p1 = pneg %p1807_p0 }
  0x6e   : > { %p1813_p8 = pnand %p1811_p5, %p1808_p1 }
  0x70   : > { %1816 = shalt.err (!%p1813_p8)
}
  0x71   : > { %s1817_s30 = scalar_lea.vmem %s339_s28, 256  ;;  %p2746_p13 = pmov %p2745_p4 }
  0x72   : > { %p1818_p11 = scmp.ne.s32.totalorder %s339_s28, %s1817_s30  ;;  %p1825_p6 = scmp.lt.s32.totalorder %s339_s28, %s339_s28 }
  0x73   : > { %p1826_p12 = scmp.lt.s32.totalorder %s1817_s30, %s1817_s30 }
  0x74   : > { %p1820_p2 = pnand %p1818_p11, %p2746_p13 }
  0x75   : > { %p1827_p9 = por %p1826_p12, %p1825_p6 }
  0x76   : > { %p1821_p3 = pneg %p1820_p2 }
  0x78   : > { %p1828_p4 = pnand %p1827_p9, %p1821_p3 }
  0x7a   : > { %1831 = shalt.err (!%p1828_p4)
}
  0x7b   : > { %1593 = dma.hbm_to_vmem [thread:$0]  (!%p2208_p7), %s2744_s4, 256, %s339_s28, [#allocation10], %s2743_s25, %s2743_s25, %s2742_s7  }
  0x7c   : > { %s1419_s29 = sadd.s32 4294967294, %s2054_s23   ;;  %s43_s12 = sadd.s32 1, %s2046_s21 }
  0x7d   : > { %s46_s9 = sadd.s32 1, %s2050_s22  ;;  %p44_p9 = scmp.ge.s32.totalorder %s43_s12, 2 }
  0x7e   : > { %s55_s3 = sadd.s32 1, %s2034_s18  ;;  %p62_p12 = scmp.ne.s32.totalorder %s2034_s18, %s2030_s17 }
  0x7f   : > { %p68_p10 = scmp.ne.s32.totalorder %s2030_s17, %s2026_s16  ;;  %s2798_s12 = smov (%p44_p9, %s43_s12), 0 }
  0x80   : > { %2747 = sst [smem:[#allocation26_spill]] %s2798_s12  ;;  %s2800_s9 = smov (!%p44_p9, %s46_s9), %s2050_s22 }
  0x81   : > { %s51_s11 = ssub.s32 %s2046_s21, %s2798_s12  ;;  %p2748_p0 = scmp.eq.s32.totalorder %s2054_s23, 0 }
  0x82   : > { %p48_p1 = scmp.ge.s32.totalorder %s2800_s9, 2  ;;  %p2750_p5 = scmp.eq.s32.totalorder %s2188_s24, 0 }
  0x83   : > { %p2339_p7 = por %p2748_p0, %p62_p12  ;;  %s81_s6 = sadd.s32 1, %s2022_s15 }
  0x84   : > { %p2348_p8 = por %p2750_p5, %p68_p10  ;;  %p272_p11 = scmp.eq.s32.totalorder %s2188_s24, 3 }
  0x85   : > { %s2802_s9 = smov (%p48_p1, %s2800_s9), 0  ;;  %p278_p2 = scmp.eq.s32.totalorder %s1419_s29, 3 }
  0x86   : > { %s2751_s19 = scalar_select %p2348_p8, 1, 0 }
  0x87   : > { %2753 = sst [smem:[#allocation28_spill]] %s2802_s9  ;;  %p2356_p13 = por %p272_p11, %p62_p12 }
  0x88   : > { %2752 = sst [smem:[#allocation27_spill]] %s2751_s19  ;;  %s50_s30 = ssub.s32 %s2050_s22, %s2802_s9 }
  0x89   : > { %s2754_s13 = scalar_select %p2356_p13, 1, 0 }
  0x8a   : > { %s364_s1 = sand.u32 1, %s2034_s18   ;;  %s52_s8 = sor.u32 %s51_s11, %s50_s30 }
  0x8b   : > { %2755 = sst [smem:[#allocation29_spill]] %s2754_s13  ;;  %p79_p3 = scmp.eq.s32.totalorder %s50_s30, 0 }
  0x8c   : > { %p53_p6 = scmp.eq.s32.totalorder %s52_s8, 0  ;;  %p2366_p4 = por %p278_p2, %p68_p10 }
  0x8d   : > { %s2371_s12 = scalar_select %p79_p3, %s2022_s15, %s81_s6  }
  0x8e   : > { %s2756_s4 = scalar_select %p2366_p4, 1, 0 }
  0x8f   : > { %s2374_s13 = scalar_select %p53_p6, %s2034_s18, %s55_s3  }
  0x90   : > { %s1424_s29 = sshll.u32 %s364_s1, 2  ;;  %s1425_s9 = sshll.u32 %s2050_s22, 1 }
  0x91   : > { %s373_s14 = sadd.s32 %s2046_s21, %s1425_s9  ;;  %s368_s11 = scalar_lea.vmem [#allocation3], %s1424_s29 }
  0x92   : > { %s377_s24 = sshll.u32 %s368_s11, 4  ;;  %s1426_s30 = sshll.u32 %s373_s14, 6  ;;  %s2380_s24 = int_to_ptr.vmem [resolvable:$true] %s377_s24 }
  0x93   : > { %s2385_s19 = scalar_lea.hbm %s2680_s0, %s1426_s30  ;;  %p2757_p9 = scmp.lt.s32.totalorder %s2054_s23, 4 }
  0x94   : > { %s1832_s6 = scalar_lea.hbm %s2265_s5, 128  ;;  %p2759_p0 = scmp.ne.s32.totalorder %s2741_s10, 0 }
  0x95   : > { %p2391_p12 = pnand %p2757_p9, %p2339_p7  ;;  %p1833_p10 = scmp.ne.s32.totalorder %s2265_s5, %s1832_s6 }
  0x96   : > { %p2760_p1 = pneg %p2759_p0  ;;  %s1837_s29 = scalar_lea.hbm %s2682_s2, 256 }
  0x97   : > { %p1838_p2 = scmp.lt.u32.totalorder %s2265_s5, %s2682_s2  ;;  %p1839_p3 = scmp.lt.u32.totalorder %s1837_s29, %s1832_s6 }
  0x98   : > { %p1835_p5 = pnand %p1833_p10, %p2760_p1  ;;  %p1841_p7 = scmp.lt.u32.totalorder %s1832_s6, %s2265_s5 }
  0x99   : > { %p1840_p6 = por %p1839_p3, %p1838_p2 }
  0x9a   : > { %p1836_p11 = pneg %p1835_p5 }
  0x9b   : > { %p1842_p9 = por %p1841_p7, %p1840_p6 }
  0x9d   : > { %p1843_p4 = pnand %p1842_p9, %p1836_p11 }
  0x9f   : > { %1846 = shalt.err (!%p1843_p4)
}
  0xa0   : > { %s1847_s28 = scalar_lea.vmem %s2299_s27, 128  ;;  %s2061_s30 = smov [#allocation8]  }
  0xa1   : > { %p1848_p10 = scmp.ne.s32.totalorder %s2299_s27, %s1847_s28  ;;  %s1852_s8 = sshll.u32 %s2061_s30, 4  ;;  %s1853_s8 = int_to_ptr.vmem [resolvable:$false] %s1852_s8 }
  0xa2   : > { %s1854_s14 = scalar_lea.vmem %s1853_s8, 256  ;;  %p1855_p8 = scmp.lt.s32.totalorder %s2299_s27, %s1853_s8 }
  0xa3   : > { %p1850_p5 = pnand %p1848_p10, %p2760_p1  ;;  %p1856_p2 = scmp.lt.s32.totalorder %s1854_s14, %s1847_s28 }
  0xa5   : > { %p1851_p13 = pneg %p1850_p5  ;;  %p1857_p3 = por %p1856_p2, %p1855_p8 }
  0xa7   : > { %p1858_p6 = pnand %p1857_p3, %p1851_p13 }
  0xa9   : > { %1861 = shalt.err (!%p1858_p6)
}
  0xaa   : > { %1603 = dma.hbm_to_vmem [thread:$0]  (!%p2759_p0), %s2265_s5, 128, %s2299_s27, %s2267_s20, %s2743_s25, %s2743_s25, %s2742_s7  }
  0xab   : > { %s365_s6 = scalar_lea.sflag [#allocation4], %s364_s1  ;;  %s1862_s9 = scalar_lea.hbm %s2385_s19, 64 }
  0xac   : > { %p1863_p8 = scmp.ne.s32.totalorder %s2385_s19, %s1862_s9  ;;  %p1864_p13 = pneg %p2391_p12 }
  0xad   : > { %s1867_s11 = scalar_lea.hbm %s2680_s0, 256  ;;  %p1868_p7 = scmp.lt.u32.totalorder %s2385_s19, %s2680_s0 }
  0xae   : > { %p1865_p4 = pnand %p1864_p13, %p1863_p8  ;;  %p1869_p9 = scmp.lt.u32.totalorder %s1867_s11, %s1862_s9 }
  0xaf   : > { %p1871_p10 = scmp.lt.u32.totalorder %s1862_s9, %s2385_s19 }
  0xb0   : > { %p1866_p11 = pneg %p1865_p4  ;;  %p1870_p0 = por %p1869_p9, %p1868_p7 }
  0xb2   : > { %p1872_p1 = por %p1871_p10, %p1870_p0 }
  0xb4   : > { %p1873_p5 = pnand %p1872_p1, %p1866_p11 }
  0xb6   : > { %1876 = shalt.err (!%p1873_p5)
}
  0xb7   : > { %s1877_s5 = scalar_lea.vmem %s2380_s24, 64  ;;  %s2062_s20 = smov [#allocation3]  }
  0xb8   : > { %p1878_p2 = scmp.ne.s32.totalorder %s2380_s24, %s1877_s5  ;;  %s1882_s7 = sshll.u32 %s2062_s20, 4  ;;  %s1883_s7 = int_to_ptr.vmem [resolvable:$false] %s1882_s7 }
  0xb9   : > { %s1884_s25 = scalar_lea.vmem %s1883_s7, 128  ;;  %p1885_p8 = scmp.lt.s32.totalorder %s2380_s24, %s1883_s7 }
  0xba   : > { %p1880_p3 = pnand %p1878_p2, %p1864_p13  ;;  %p1886_p4 = scmp.lt.s32.totalorder %s1884_s25, %s1877_s5 }
  0xbc   : > { %p1881_p6 = pneg %p1880_p3  ;;  %p1887_p7 = por %p1886_p4, %p1885_p8 }
  0xbe   : > { %p1888_p9 = pnand %p1887_p7, %p1881_p6 }
  0xc0   : > { %1891 = shalt.err (!%p1888_p9)
}
  0xc1   : > { %1597 = dma.hbm_to_vmem [thread:$0]  (!%p2391_p12), %s2385_s19, 64, %s2380_s24, %s365_s6  }
  0xc2   : > { %p2761_p11 = scmp.ne.s32.totalorder %s2736_s26, 0 }
  0xc3   : > { %s2762_s27 = sld [smem:[#allocation27_spill]] (!%p2761_p11)  ;;  %s2452_s1 = sand.u32 (!%p2761_p11), 1, %s2030_s17  }
  0xc4   : > { %428 = sbr.rel (%p2761_p11) target bundleno = 1905 (0x771), region = 56  ;;  %s1434_s30 = sshll.u32 (!%p2761_p11), %s2452_s1, 2 }
  0xc5   : > { %s431_s8 = scalar_lea.sflag (!%p2761_p11), [#allocation4], %s2452_s1  ;;  %s2456_s14 = scalar_lea.vmem (!%p2761_p11), [#allocation3], %s1434_s30 }
  0xc9   : > { %p2763_p13 = scmp.ne.s32.totalorder (!%p2761_p11), %s2762_s27, 0 }
  0xcb   : > { %1993 = dma.done.wait (%p2763_p13), %s431_s8, 64  }
  0xcc   : > { %1995 = vsyncadd (%p2763_p13), %s431_s8, 4294967232  ;;  %s2764_s3 = sld [smem:[#allocation24_spill]]  ;;  %s2765_s24 = sld [smem:[#allocation20_spill]] }
  0xcd   : > { %s2766_s19 = sld [smem:[#allocation25_spill]] }
  0xd2   : > { %s439_s26 = sand.u32 1, %s2764_s3   ;;  %s441_s6 = sand.u32 1, %s2765_s24  }
  0xd3   : > { %s1435_s9 = sshll.u32 %s441_s6, 3  ;;  %s440_s10 = scalar_lea.sflag [#allocation7], %s439_s26 }
  0xd4   : > { %s443_s29 = scalar_lea.vmem [#allocation6], %s1435_s9  ;;  %p2767_p12 = scmp.ne.s32.totalorder %s2766_s19, 0 }
  0xd6   : > { %1997 = dma.done.wait (%p2767_p12), %s440_s10, 256  }
  0xd7   : > { %1999 = vsyncadd (%p2767_p12), %s440_s10, 4294967040  ;;  %p2768_p0 = scmp.eq.s32.totalorder %s2764_s3, 0 }
  0xd9   : > { %2001 = dma.done.wait (%p2768_p0), [#allocation10], 512   ;;  %p2769_p10 = pmov %p2768_p0 }
  0xda   : > { %s1438_s11 = sshll.u32 %s2452_s1, 3  ;;  %s2770_s5 = sld [smem:[#allocation22_spill]] }
  0xdb   : > { %2003 = vsyncadd (%p2769_p10), [#allocation10], 4294966784  ;;  %s2473_s16 = scalar_lea.vmem [#allocation12], %s1438_s11  ;;  %s2475_s28 = scalar_lea.vmem [#allocation13], %s1438_s11 }
  0xe0   : > { %p1440_p1 = scmp.ne.s32.totalorder %s2770_s5, 0 }
  0xe1   : > { %v1723_v0 = vld [vmem:[#allocation11] sm:$0xff] (!%p1440_p1)   ;;  %v2063_v1 = vmov (!%p1440_p1), 0.0   ;;  %v1724_v2 = vld [vmem:[#allocation11 + $0x8] sm:$0xff] (!%p1440_p1)   ;;  %vm2064_vm0 = vmmov (!%p1440_p1), 0   ;;  %v1725_v3 = vld [vmem:[%s443_s29] sm:$0xff] (!%p1440_p1)   ;;  %vm547_vm1 = vcmask (!%p1440_p1), 261120  }
  0xe2   : > { %516 = sbr.rel (%p1440_p1) target bundleno = 453 (0x1c5), region = 80  ;;  %1497 = vmatprep.subr.bf16.mxu0 (!%p1440_p1), %v2063_v1  ;;  %1501 = vmatprep.mubr.msk.bf16.mxu0 (!%p1440_p1), %vm2064_vm0, %v2063_v1  ;;  %s2771_s25 = sld [smem:[#allocation35_spill]] (!%p1440_p1)  ;;  %vm593_vm2 = vcmask (!%p1440_p1), 523264  }
  0xe3   : > { %1498 = vmatpush3.bf16.msra.mxu0 (!%p1440_p1), %v1723_v0 }
  0xe4   : > { %1499 = vmatprep.subr.bf16.mxu0 (!%p1440_p1), %v2063_v1 }
  0xe7   : > { %1500 = vmatpush3.bf16.msra.mxu0 (!%p1440_p1), %v1724_v2 }
  0xe8   : > { %v1441_v4 = vld [vmem:[%s2771_s25] ss:$0 sm:$0xff] (!%p1440_p1) }
  0xea   : > { %1502 = vmatmul.mubr.msk.bf16.vlgmr.msra.gmra.mrb[0].mxu0 %vm547_vm1, %v1725_v3 }
 0x1bd   : > { %v585_v5 = vpop.f32.mrb[0].mxu0 }
 0x1be   : > { %v1503_v6 = vpop.f32.mrb[1].mxu0  ;;  %v586_v8 = vadd.f32 %v1441_v4, %v585_v5 }
 0x1bf   : > { %v588_v7 = vpop.f32.mrb[2].mxu0 }
 0x1c0   : > { %v589_v9 = vadd.f32 %v1441_v4, %v588_v7  ;;  %v1504_v10 = vpop.f32.mrb[3].mxu0 }
 0x1c2   : > { %v592_v11 = vpack.c.bf16 %v589_v9, %v586_v8 }
 0x1c4   : > { %594 = vst.msk [vmem:[#allocation2] sm:$0xff] %vm593_vm2, %v592_v11 }
 0x1c5 PF: > { %v1726_v12 = vld [vmem:[#allocation9] sm:$0xff]   ;;  %v2065_v13 = vmov 0.0   ;;  %v1727_v14 = vld [vmem:[#allocation9 + $0x8] sm:$0xff]   ;;  %vm2066_vm3 = vmmov 0   ;;  %s2067_s27 = smov 120   ;;  %vm619_vm4 = vcmask 261120  }
 0x1c6   : > { %1505 = vmatprep.subr.bf16.mxu0 %v2065_v13  ;;  %1513 = vmatprep.subr.bf16.mxu1 %v2065_v13  ;;  %v595_v16 = vld [vmem:[%s2456_s14] sm:$0xf]  ;;  %vm668_vm5 = vcmask 64512   ;;  %s2068_s30 = smov 112   ;;  %s2772_s3 = sld [smem:[#allocation34_spill]]  ;;  %vm666_vm6 = vcmask 130048  }
 0x1c7   : > { %1506 = vmatpush3.bf16.msra.mxu0 %v1726_v12  ;;  %1509 = vmatprep.mubr.msk.bf16.mxu0 %vm2066_vm3, %v2065_v13  ;;  %s2069_s24 = smov 104   ;;  %667 = vst.msk [vmem:[%s2475_s28] sm:$0xff] %vm666_vm6, %v2065_v13  ;;  %s2070_s19 = smov 96   ;;  %vm1129_vm7 = vcmask 195584  }
 0x1c8   : > { %1507 = vmatprep.subr.bf16.mxu0 %v2065_v13  ;;  %1515 = vmatprep.mubr.msk.bf16.mxu1 %vm2066_vm3, %v2065_v13  ;;  %s2071_s26 = smov 80   ;;  %s2072_s6 = smov 72  }
 0x1c9   : > { %s2073_s9 = smov 88   ;;  %s2773_s11 = sld [smem:[#allocation33_spill]] }
 0x1ca   : > { %s2074_s7 = smov 8   ;;  %s2075_s25 = smov 16  }
 0x1cb   : > { %v2485_v15 = vld [vmem:[#allocation2] sm:$0xff]  ;;  %1508 = vmatpush3.bf16.msra.mxu0 %v1727_v14  ;;  %s2076_s8 = smov 24   ;;  %s2776_s14 = sld [smem:[#allocation29_spill]] }
 0x1cc   : > { %781 = vrot.lane.b32.xlu0 %v2485_v15, %s2067_s27  ;;  %1519 = vmatprep.subr.bf16.mxu0 %v2065_v13  ;;  %v673_v17 = vsel %vm668_vm5, %v2485_v15, 0  ;;  %v1446_v18 = vld [vmem:[%s2772_s3] ss:$0 sm:$0xff]  ;;  %s1237_s29 = sshll.u32 %s2475_s28, 4  ;;  %s1207_s5 = scalar_lea.sflag [#allocation14], %s2452_s1  ;;  %s1238_s29 = int_to_ptr.vmem [resolvable:$true] %s1237_s29 }
 0x1cd   : > { %1514 = vmatpush3.bf16.xpose.msra.mxu1 %v673_v17  ;;  %893 = vrot.lane.b32.xlu1 %v2485_v15, %s2068_s30  ;;  %s1892_s20 = scalar_lea.vmem %s1238_s29, 128 }
 0x1ce   : > { %1510 = vmatmul.mubr.msk.bf16.vlgmr.msra.gmra.mrb[0].mxu0 %vm619_vm4, %v595_v16  ;;  %1525 = vmatprep.subr.bf16.mxu1 %v2065_v13  ;;  %v726_v16 = vld [vmem:[%s2475_s28] sm:$0xff]  ;;  %p1893_p5 = scmp.ne.s32.totalorder %s1238_s29, %s1892_s20 }
 0x1cf   : > { %1521 = vmatprep.mubr.msk.bf16.mxu0 %vm2066_vm3, %v2065_v13 }
 0x1d1   : > { %p2778_p2 = scmp.ne.s32.totalorder %s2776_s14, 0 }
 0x1d3   : > { %p1894_p3 = pnand %p1893_p5, %p2778_p2 }
 0x1d5   : > { %p1895_p6 = pneg %p1894_p3 }
 0x23e   : > { %v782_v25 = vpop.permute.xlu0 %781 }
 0x23f   : > { %v787_v27 = vsel %vm668_vm5, %v782_v25, 0  ;;  %v894_v28 = vpop.permute.xlu1 %893 }
 0x240   : > { %v899_v29 = vsel %vm668_vm5, %v894_v28, 0 }
 0x2a1   : > { %v657_v19 = vpop.f32.mrb[0].mxu0 }
 0x2a2   : > { %v658_v20 = vadd.f32 %v1446_v18, %v657_v19  ;;  %v1511_v21 = vpop.f32.mrb[1].mxu0 }
 0x2a3   : > { %v660_v22 = vpop.f32.mrb[2].mxu0 }
 0x2a4   : > { %v663_v23 = vmul.f32 0.35355338, %v658_v20  ;;  %v1512_v24 = vpop.f32.mrb[3].mxu0 }
 0x2a6   : > { %v664_v26 = vpack.c.bf16 %v663_v23, %v663_v23 }
 0x2a8   : > { %891 = vrot.lane.b32.xlu1 %v664_v26, %s2068_s30  ;;  %779 = vrot.lane.b32.xlu0 %v664_v26, %s2067_s27  ;;  %s2774_s27 = sld [smem:[#allocation23_spill]]  ;;  %s2775_s30 = sld [smem:[#allocation22_spill]] }
 0x2a9   : > { %1516 = vmatmul.mubr.msk.bf16.vlgmr.msra.gmra.mrb[0].mxu1 %vm668_vm5, %v664_v26 }
 0x2aa   : > { %1526 = vmatpush3.bf16.xpose.msra.mxu1 %v787_v27  ;;  %1527 = vmatprep.mubr.msk.bf16.mxu1 %vm2066_vm3, %v2065_v13 }
 0x2ab   : > { %1537 = vmatprep.subr.bf16.mxu1 %v2065_v13 }
 0x2ac   : > { %1003 = vrot.lane.b32.xlu1 %v664_v26, %s2069_s24  ;;  %1005 = vrot.lane.b32.xlu0 %v2485_v15, %s2069_s24 }
 0x2ae   : > { %s1464_s3 = sshll.u32 %s2774_s27, 1 }
 0x2af   : > { %s2577_s24 = sadd.s32 %s2775_s30, %s1464_s3 }
 0x31a   : > { %v780_v30 = vpop.permute.xlu0 %779  ;;  %v892_v33 = vpop.permute.xlu1 %891 }
 0x31b   : > { %1528 = vmatmul.mubr.msk.bf16.vlgmr.msra.gmra.mrb[4].mxu1 %vm668_vm5, %v780_v30 }
 0x31c   : > { %1538 = vmatpush3.bf16.xpose.msra.mxu1 %v899_v29  ;;  %1539 = vmatprep.mubr.msk.bf16.mxu1 %vm2066_vm3, %v2065_v13 }
 0x31d   : > { %1549 = vmatprep.subr.bf16.mxu1 %v2065_v13 }
 0x31e   : > { %v1006_v31 = vpop.permute.xlu0 %1005  ;;  %v1004_v34 = vpop.permute.xlu1 %1003 }
 0x31f   : > { %v1011_v32 = vsel %vm668_vm5, %v1006_v31, 0 }
 0x323   : > { %1540 = vmatmul.mubr.msk.bf16.vlgmr.msra.gmra.mrb[8].mxu1 %vm668_vm5, %v892_v33 }
 0x324   : > { %1550 = vmatpush3.bf16.xpose.msra.mxu1 %v1011_v32  ;;  %1551 = vmatprep.mubr.msk.bf16.mxu1 %vm2066_vm3, %v2065_v13 }
 0x325   : > { %1561 = vmatprep.subr.bf16.mxu1 %v2065_v13 }
 0x32b   : > { %1552 = vmatmul.mubr.msk.bf16.vlgmr.msra.gmra.mrb[12].mxu1 %vm668_vm5, %v1004_v34 }
 0x32c   : > { %1565 = vmatprep.mubr.msk.bf16.mxu1 %vm2066_vm3, %v2065_v13 }
 0x37c   : > { %v709_v35 = vpop.f32.mrb[0].mxu1 }
 0x37d   : > { %v1517_v36 = vpop.f32.mrb[1].mxu1  ;;  %v715_v37 = vsel %vm666_vm6, %v709_v35, -inf }
 0x37e   : > { %716 = vmax.xlane.f32.xlu0 %v715_v37  ;;  %v712_v38 = vpop.f32.mrb[2].mxu1 }
 0x37f   : > { %v1518_v39 = vpop.f32.mrb[3].mxu1 }
 0x3ee   : > { %v823_v40 = vpop.f32.mrb[4].mxu1 }
 0x3ef   : > { %v1529_v41 = vpop.f32.mrb[5].mxu1  ;;  %v829_v42 = vsel %vm666_vm6, %v823_v40, -inf }
 0x3f0   : > { %830 = vmax.xlane.f32.xlu1 %v829_v42  ;;  %v826_v43 = vpop.f32.mrb[6].mxu1 }
 0x3f1   : > { %v1530_v44 = vpop.f32.mrb[7].mxu1 }
 0x3f6   : > { %v935_v45 = vpop.f32.mrb[8].mxu1 }
 0x3f7   : > { %v1541_v46 = vpop.f32.mrb[9].mxu1  ;;  %v941_v47 = vsel %vm666_vm6, %v935_v45, -inf }
 0x3f8   : > { %942 = vmax.xlane.f32.xlu0 %v941_v47  ;;  %v938_v48 = vpop.f32.mrb[10].mxu1  ;;  %v1728_v46 = vld [vmem:[%s2773_s11] sm:$0xff]  }
 0x3f9   : > { %v1542_v49 = vpop.f32.mrb[11].mxu1  ;;  %1562 = vmatpush3.bf16.msra.mxu1 %v1728_v46  ;;  %v1729_v48 = vld [vmem:[%s2773_s11 + $0x8] sm:$0xff]  }
 0x3fa   : > { %1563 = vmatprep.subr.bf16.mxu1 %v2065_v13 }
 0x3fd   : > { %1564 = vmatpush3.bf16.msra.mxu1 %v1729_v48 }
 0x3fe   : > { %v1047_v50 = vpop.f32.mrb[12].mxu1 }
 0x3ff   : > { %v1553_v51 = vpop.f32.mrb[13].mxu1  ;;  %v1053_v52 = vsel %vm666_vm6, %v1047_v50, -inf }
 0x400   : > { %1054 = vmax.xlane.f32.xlu0 %v1053_v52  ;;  %v1050_v53 = vpop.f32.mrb[14].mxu1 }
 0x401   : > { %v1554_v54 = vpop.f32.mrb[15].mxu1 }
 0x40b   : > { %v717_v55 = vpop.xlane.xlu0 %716 }
 0x40c   : > { %v718_v56 = vsub.f32 %v709_v35, %v717_v55 }
 0x40e   : > { %v719_v57 = vmul.f32 1.442695, %v718_v56 }
 0x410   : > { %1730 = vpow2.f32 %v719_v57 }
 0x41a   : > { %v1731_v58 = vpop.eup %1730 }
 0x41b   : > { %v721_v59 = vsel %vm666_vm6, %v1731_v58, 0.0 }
 0x41c   : > { %722 = vadd.xlane.f32.xlu1 %v721_v59 }
 0x42d   : > { %731 = vrot.lane.b32.xlu1 %v2485_v15, %s2070_s19  ;;  %s1465_s19 = sshll.u32 %s2577_s24, 7 }
 0x47d   : > { %v831_v60 = vpop.xlane.xlu1 %830 }
 0x47e   : > { %v832_v61 = vsub.f32 %v823_v40, %v831_v60 }
 0x480   : > { %v833_v62 = vmul.f32 1.442695, %v832_v61 }
 0x482   : > { %1732 = vpow2.f32 %v833_v62 }
 0x485   : > { %v943_v63 = vpop.xlane.xlu0 %942 }
 0x486   : > { %v944_v0 = vsub.f32 %v935_v45, %v943_v63 }
 0x488   : > { %v945_v1 = vmul.f32 1.442695, %v944_v0 }
 0x48a   : > { %1734 = vpow2.f32 %v945_v1 }
 0x48c   : > { %v1733_v2 = vpop.eup %1732 }
 0x48d   : > { %v1055_v3 = vpop.xlane.xlu0 %1054  ;;  %v835_v4 = vsel %vm666_vm6, %v1733_v2, 0.0 }
 0x48e   : > { %v1056_v5 = vsub.f32 %v1047_v50, %v1055_v3  ;;  %836 = vadd.xlane.f32.xlu0 %v835_v4 }
 0x490   : > { %v1057_v6 = vmul.f32 1.442695, %v1056_v5 }
 0x492   : > { %1736 = vpow2.f32 %v1057_v6 }
 0x494   : > { %v1735_v7 = vpop.eup %1734 }
 0x495   : > { %v947_v8 = vsel %vm666_vm6, %v1735_v7, 0.0 }
 0x496   : > { %948 = vadd.xlane.f32.xlu1 %v947_v8 }
 0x49c   : > { %v1737_v9 = vpop.eup %1736 }
 0x49d   : > { %v1059_v10 = vsel %vm666_vm6, %v1737_v9, 0.0 }
 0x49e   : > { %1060 = vadd.xlane.f32.xlu0 %v1059_v10 }
 0x4a7   : > { %956 = vrot.lane.b32.xlu1 %v2485_v15, %s2071_s26 }
 0x4a9   : > { %v723_v11 = vpop.xlane.xlu1 %722 }
 0x4aa   : > { %1738 = vrcp.f32 %v723_v11 }
 0x4ab   : > { %1068 = vrot.lane.b32.xlu1 %v2485_v15, %s2072_s6 }
 0x4ad   : > { %v732_v12 = vpop.permute.xlu1 %731 }
 0x4ae   : > { %1520 = vmatpush3.bf16.msra.mxu0 %v732_v12 }
 0x4af   : > { %1531 = vmatprep.subr.bf16.mxu0 %v2065_v13 }
 0x4b4   : > { %v1739_v14 = vpop.eup %1738  ;;  %844 = vrot.lane.b32.xlu0 %v2485_v15, %s2073_s9  ;;  %s2777_s9 = sld [smem:[#allocation38_spill]] }
 0x4b5   : > { %v725_v17 = vmul.f32 %v1739_v14, %v1731_v58 }
 0x4b7   : > { %v727_v18 = vadd.f32 %v726_v16, %v725_v17  ;;  %v729_v19 = vpack.c.bf16 %v725_v17, %v725_v17 }
 0x4b9   : > { %728 = vst.msk [vmem:[%s2475_s28] sm:$0xff] %vm666_vm6, %v727_v18  ;;  %1522 = vmatmul.mubr.msk.bf16.vlgmr.msra.gmra.mrb[4].mxu0 %vm666_vm6, %v729_v19 }
 0x4ba   : > { %1533 = vmatprep.mubr.msk.bf16.mxu0 %vm2066_vm3, %v2065_v13  ;;  %s2585_s10 = scalar_lea.hbm %s2777_s9, %s1465_s19 }
 0x4c0   : > { %v840_v24 = vld [vmem:[%s2475_s28] sm:$0xff] }
 0x51b   : > { %v837_v20 = vpop.xlane.xlu0 %836 }
 0x51c   : > { %1740 = vrcp.f32 %v837_v20 }
 0x523   : > { %v949_v21 = vpop.xlane.xlu1 %948 }
 0x524   : > { %1742 = vrcp.f32 %v949_v21 }
 0x526   : > { %v1741_v22 = vpop.eup %1740 }
 0x527   : > { %v839_v23 = vmul.f32 %v1741_v22, %v1733_v2  ;;  %v957_v30 = vpop.permute.xlu1 %956 }
 0x529   : > { %v841_v25 = vadd.f32 %v840_v24, %v839_v23  ;;  %v843_v29 = vpack.c.bf16 %v839_v23, %v839_v23 }
 0x52b   : > { %842 = vst.msk [vmem:[%s2475_s28] sm:$0xff] %vm666_vm6, %v841_v25  ;;  %v1061_v15 = vpop.xlane.xlu0 %1060  ;;  %v1069_v35 = vpop.permute.xlu1 %1068 }
 0x52c   : > { %1744 = vrcp.f32 %v1061_v15 }
 0x52e   : > { %v1743_v26 = vpop.eup %1742 }
 0x52f   : > { %v845_v27 = vpop.permute.xlu0 %844  ;;  %v951_v28 = vmul.f32 %v1743_v26, %v1735_v7 }
 0x530   : > { %1532 = vmatpush3.bf16.msra.mxu0 %v845_v27 }
 0x531   : > { %1543 = vmatprep.subr.bf16.mxu0 %v2065_v13  ;;  %v955_v34 = vpack.c.bf16 %v951_v28, %v951_v28 }
 0x532   : > { %v952_v31 = vld [vmem:[%s2475_s28] sm:$0xff] }
 0x533   : > { %v953_v32 = vadd.f32 %v952_v31, %v951_v28  ;;  %1534 = vmatmul.mubr.msk.bf16.vlgmr.msra.gmra.mrb[8].mxu0 %vm666_vm6, %v843_v29 }
 0x534   : > { %1544 = vmatpush3.bf16.msra.mxu0 %v957_v30  ;;  %1545 = vmatprep.mubr.msk.bf16.mxu0 %vm2066_vm3, %v2065_v13 }
 0x535   : > { %954 = vst.msk [vmem:[%s2475_s28] sm:$0xff] %vm666_vm6, %v953_v32  ;;  %1555 = vmatprep.subr.bf16.mxu0 %v2065_v13 }
 0x536   : > { %v1745_v33 = vpop.eup %1744 }
 0x537   : > { %v1063_v36 = vmul.f32 %v1745_v33, %v1737_v9 }
 0x539   : > { %v1067_v39 = vpack.c.bf16 %v1063_v36, %v1063_v36 }
 0x53b   : > { %1546 = vmatmul.mubr.msk.bf16.vlgmr.msra.gmra.mrb[12].mxu0 %vm666_vm6, %v955_v34 }
 0x53c   : > { %1556 = vmatpush3.bf16.msra.mxu0 %v1069_v35  ;;  %1557 = vmatprep.mubr.msk.bf16.mxu0 %vm2066_vm3, %v2065_v13  ;;  %v1064_v37 = vld [vmem:[%s2475_s28] sm:$0xff] }
 0x53d   : > { %v1065_v38 = vadd.f32 %v1064_v37, %v1063_v36 }
 0x53f   : > { %1066 = vst.msk [vmem:[%s2475_s28] sm:$0xff] %vm666_vm6, %v1065_v38 }
 0x543   : > { %1558 = vmatmul.mubr.msk.bf16.vlgmr.msra.gmra.mrb[16].mxu0 %vm666_vm6, %v1067_v39 }
 0x546   : > { %v1198_v40 = vld [vmem:[%s2475_s28] sm:$0xff] }
 0x547   : > { %v1199_v41 = vmul.f32 0.25, %v1198_v40 }
 0x549   : > { %1200 = vst.msk [vmem:[%s2475_s28] sm:$0xff] %vm666_vm6, %v1199_v41 }
 0x58c   : > { %v771_v42 = vpop.f32.mrb[4].mxu0 }
 0x58d   : > { %v1523_v43 = vpop.f32.mrb[5].mxu0  ;;  %v777_v63 = vpack.c.bf16 %v771_v42, %v771_v42 }
 0x58e   : > { %v774_v44 = vpop.f32.mrb[6].mxu0 }
 0x58f   : > { %v1524_v45 = vpop.f32.mrb[7].mxu0 }
 0x606   : > { %v884_v47 = vpop.f32.mrb[8].mxu0 }
 0x607   : > { %v890_v49 = vpack.c.bf16 %v884_v47, %v884_v47  ;;  %v1535_v50 = vpop.f32.mrb[9].mxu0 }
 0x608   : > { %v887_v51 = vpop.f32.mrb[10].mxu0 }
 0x609   : > { %1116 = vrot.lane.b32.xlu0 %v890_v49, %s2074_s7  ;;  %v1536_v52 = vpop.f32.mrb[11].mxu0  ;;  %s2077_s7 = smov [#allocation13]  }
 0x60e   : > { %v996_v53 = vpop.f32.mrb[12].mxu0 }
 0x60f   : > { %v1002_v54 = vpack.c.bf16 %v996_v53, %v996_v53  ;;  %v1547_v55 = vpop.f32.mrb[13].mxu0 }
 0x610   : > { %v999_v56 = vpop.f32.mrb[14].mxu0 }
 0x611   : > { %1119 = vrot.lane.b32.xlu1 %v1002_v54, %s2075_s25  ;;  %v1548_v57 = vpop.f32.mrb[15].mxu0  ;;  %s1896_s25 = sshll.u32 %s2077_s7, 4  ;;  %s1897_s25 = int_to_ptr.vmem [resolvable:$false] %s1896_s25 }
 0x612   : > { %s1898_s27 = scalar_lea.vmem %s1897_s25, 256  ;;  %p1899_p8 = scmp.lt.s32.totalorder %s1238_s29, %s1897_s25 }
 0x613   : > { %p1900_p4 = scmp.lt.s32.totalorder %s1898_s27, %s1892_s20 }
 0x615   : > { %p1901_p7 = por %p1900_p4, %p1899_p8 }
 0x616   : > { %v1108_v58 = vpop.f32.mrb[16].mxu0 }
 0x617   : > { %v1114_v59 = vpack.c.bf16 %v1108_v58, %v1108_v58  ;;  %v1559_v60 = vpop.f32.mrb[17].mxu0  ;;  %p1902_p9 = pnand %p1901_p7, %p1895_p6 }
 0x618   : > { %v1111_v61 = vpop.f32.mrb[18].mxu0 }
 0x619   : > { %1122 = vrot.lane.b32.xlu0 %v1114_v59, %s2076_s8  ;;  %v1560_v13 = vpop.f32.mrb[19].mxu0 }
 0x67b   : > { %v1117_v62 = vpop.permute.xlu0 %1116 }
 0x67c   : > { %v1126_v1 = vsel %vm668_vm5, %v777_v63, %v1117_v62 }
 0x683   : > { %v1120_v0 = vpop.permute.xlu1 %1119 }
 0x684   : > { %v1128_v2 = vsel %vm666_vm6, %v1126_v1, %v1120_v0 }
 0x68b   : > { %v1123_v3 = vpop.permute.xlu0 %1122 }
 0x68c   : > { %v1131_v4 = vsel %vm1129_vm7, %v1128_v2, %v1123_v3 }
 0x68d   : > { %1566 = vmatmul.mubr.msk.bf16.vlgmr.msra.gmra.mrb[16].mxu1 %vm619_vm4, %v1131_v4 }
 0x68e   : > { %1905 = shalt.err (!%p1902_p9)
}
 0x68f   : > { %s1906_s28 = scalar_lea.hbm %s2585_s10, 128  ;;  %s1910_s3 = scalar_lea.hbm %s2777_s9, 512 }
 0x690   : > { %p1907_p11 = scmp.ne.s32.totalorder %s2585_s10, %s1906_s28  ;;  %p1911_p0 = scmp.lt.u32.totalorder %s2585_s10, %s2777_s9 }
 0x691   : > { %p1912_p10 = scmp.lt.u32.totalorder %s1910_s3, %s1906_s28  ;;  %p1914_p5 = scmp.lt.u32.totalorder %s1906_s28, %s2585_s10 }
 0x692   : > { %p1908_p13 = pnand %p1907_p11, %p2778_p2 }
 0x693   : > { %p1913_p1 = por %p1912_p10, %p1911_p0 }
 0x694   : > { %p1909_p12 = pneg %p1908_p13 }
 0x695   : > { %p1915_p3 = por %p1914_p5, %p1913_p1 }
 0x697   : > { %p1916_p6 = pnand %p1915_p3, %p1909_p12 }
 0x699   : > { %1919 = shalt.err (!%p1916_p6)
}
 0x69a   : > { %1584 = dma.vmem_to_hbm [thread:$0]  (%p2778_p2), %s1238_s29, 128, %s2585_s10, %s1207_s5  }
 0x69b   : > { %s2779_s25 = sld [smem:[#allocation36_spill]]  ;;  %s1222_s27 = sshll.u32 %s2473_s16, 4  ;;  %s2617_s27 = int_to_ptr.vmem [resolvable:$true] %s1222_s27 }
 0x69c   : > { %s2780_s8 = sld [smem:[#allocation37_spill]]  ;;  %s1202_s10 = scalar_lea.sflag [#allocation5], %s2452_s1 }
 0x69d   : > { %s1920_s29 = scalar_lea.vmem %s2617_s27, 128  ;;  %s2078_s24 = smov [#allocation12]  }
 0x69e   : > { %p1921_p8 = scmp.ne.s32.totalorder %s2617_s27, %s1920_s29  ;;  %s1924_s5 = sshll.u32 %s2078_s24, 4  ;;  %s1925_s5 = int_to_ptr.vmem [resolvable:$false] %s1924_s5 }
 0x69f   : > { %p1927_p9 = scmp.lt.s32.totalorder %s2617_s27, %s1925_s5 }
 0x6a0   : > { %p1922_p4 = pnand %p1921_p8, %p2778_p2 }
 0x6a1   : > { %v1458_v5 = vld [vmem:[%s2779_s25] ss:$0 sm:$0xff] }
 0x6a2   : > { %s2615_s3 = scalar_lea.hbm %s2780_s8, %s1465_s19  ;;  %p1923_p7 = pneg %p1922_p4 }
 0x6a3   : > { %s1926_s19 = scalar_lea.vmem %s1925_s5, 256 }
 0x6a4   : > { %p1928_p11 = scmp.lt.s32.totalorder %s1926_s19, %s1920_s29 }
 0x6a6   : > { %p1929_p13 = por %p1928_p11, %p1927_p9 }
 0x6a8   : > { %p1930_p12 = pnand %p1929_p13, %p1923_p7 }
 0x760   : > { %v1191_v6 = vpop.f32.mrb[16].mxu1 }
 0x761   : > { %v1192_v7 = vadd.f32 %v1458_v5, %v1191_v6  ;;  %v1567_v8 = vpop.f32.mrb[17].mxu1 }
 0x762   : > { %v1194_v9 = vpop.f32.mrb[18].mxu1 }
 0x763   : > { %1197 = vst.msk [vmem:[%s2473_s16] sm:$0xff] %vm619_vm4, %v1192_v7  ;;  %v1568_v10 = vpop.f32.mrb[19].mxu1 }
 0x764   : > { %1933 = shalt.err (!%p1930_p12)
}
 0x765   : > { %s1934_s1 = scalar_lea.hbm %s2615_s3, 128  ;;  %s1938_s6 = scalar_lea.hbm %s2780_s8, 512 }
 0x766   : > { %p1935_p0 = scmp.ne.s32.totalorder %s2615_s3, %s1934_s1  ;;  %p1939_p5 = scmp.lt.u32.totalorder %s2615_s3, %s2780_s8 }
 0x767   : > { %p1940_p3 = scmp.lt.u32.totalorder %s1938_s6, %s1934_s1  ;;  %p1942_p8 = scmp.lt.u32.totalorder %s1934_s1, %s2615_s3 }
 0x768   : > { %p1936_p10 = pnand %p1935_p0, %p2778_p2 }
 0x769   : > { %p1941_p6 = por %p1940_p3, %p1939_p5 }
 0x76a   : > { %p1937_p1 = pneg %p1936_p10 }
 0x76b   : > { %p1943_p4 = por %p1942_p8, %p1941_p6 }
 0x76d   : > { %p1944_p7 = pnand %p1943_p4, %p1937_p1 }
 0x76f   : > { %1947 = shalt.err (!%p1944_p7)
}
 0x770   : > { %1583 = dma.vmem_to_hbm [thread:$0]  (%p2778_p2), %s2617_s27, 128, %s2615_s3, %s1202_s10  }
 0x771 PF: > { %s2781_s25 = sld [smem:[#allocation21_spill]]  ;;  %p1616_p9 = scmp.ge.s32.totalorder %s2054_s23, 2 }
 0x772   : > { %p2782_p11 = scmp.ne.s32.totalorder %s2756_s4, 0 }
 0x774   : > { %p1605_p13 = pnand %p1616_p9, %p2782_p11 }
 0x777   : > { %s1249_s28 = sand.u32 1, %s2781_s25  }
 0x778   : > { %s1250_s30 = scalar_lea.sflag [#allocation5], %s1249_s28 }
 0x779   : > { %2005 = dma.done.wait (!%p1605_p13), %s1250_s30, 128  }
 0x77a   : > { %2007 = vsyncadd (!%p1605_p13), %s1250_s30, 4294967168  ;;  %s1259_s29 = scalar_lea.sflag [#allocation14], %s1249_s28 }
 0x77b   : > { %2009 = dma.done.wait (!%p1605_p13), %s1259_s29, 128  }
 0x77c   : > { %2011 = vsyncadd (!%p1605_p13), %s1259_s29, 4294967168  ;;  %s34_s23 = sadd.s32 1, %s2054_s23   ;;  %s2783_s14 = sld [smem:[#allocation20_spill]] }
 0x77d   : > { %p31_p12 = scmp.ge.s32.totalorder %s34_s23, 6   ;;  %s2784_s27 = smov %s2374_s13 }
 0x77e   : > { %s2785_s3 = sld [smem:[#allocation26_spill]]  ;;  %s2786_s4 = sld [smem:[#allocation28_spill]] }
 0x77f   : > { %s2790_s16 = smov %s2030_s17  ;;  %s2791_s17 = smov %s2034_s18 }
 0x780   : > { %s2792_s18 = smov %s2784_s27  ;;  %s2793_s19 = smov %s2046_s21 }
 0x781   : > { %s2794_s20 = smov %s2050_s22  ;;  %33 = sbr.rel (!%p31_p12) target bundleno = 24 (0x18), region = 154 }
 0x782   : > { %s2787_s13 = smov %s2783_s14  ;;  %s2788_s14 = smov %s2022_s15 }
 0x783   : > { %s2789_s15 = smov %s2371_s12 }
 0x784   : > { %s2795_s21 = smov %s2785_s3  ;;  %s2796_s22 = smov %s2786_s4 }
 0x788   :  { %1264 = vsyncpa [#allocation4], 1 }
 0x789   :  { %1266 = vsyncpa [#allocation4 + $0x1], 1 }
 0x78a   :  { %1267 = vsyncpa [#allocation7], 1 }
 0x78b   :  { %1269 = vsyncpa [#allocation7 + $0x1], 1 }
 0x78c   :  { %1270 = vsyncpa [#allocation10], 1 }
 0x78d   :  { %1271 = vsyncpa [#allocation5], 1 }
 0x78e   :  { %1273 = vsyncpa [#allocation5 + $0x1], 1 }
 0x78f   :  { %1274 = vsyncpa [#allocation14], 1 }
 0x790   :  { %1276 = vsyncpa [#allocation14 + $0x1], 1 }

</bundles_post_ra>
